<compile_context>
chip_gen: v7x
topology: tpu7x:2x2x1
jax: 0.10.0
libtpu: 0.0.40
codegen_flags: <defaults>
</compile_context>

<pallas_src>
import functools

import jax
import jax.numpy as jnp
from jax import lax
from jax.experimental import pallas as pl
from jax.experimental.pallas import tpu as pltpu

# ----------------------------- model config (small) ----------------------------
N_EMBD = 32            # args.n_embd
HEAD_SIZE = 8          # args.head_size
N_HEAD = N_EMBD // HEAD_SIZE
N_LAYER = 2            # args.n_layer
VOCAB = 64             # args.vocab_size
DIM_FFN = int(N_EMBD * 3.5 // 32 * 32)   # = 96 for n_embd=32
D_MIX = 16             # TIME_MIX_EXTRA_DIM
D_DECAY = 16           # TIME_DECAY_EXTRA_DIM
HEAD_SIZE_DIVISOR = 8
LN_EPS = 1e-5
GN_EPS = 1e-5 * (HEAD_SIZE_DIVISOR ** 2)
SEQ_LEN = 8            # T (<= ctx_len)


# ------------------------------ small helpers ----------------------------------
def _bf16(x):
    return x.astype(jnp.bfloat16)


def _const_spec(arr):
    """Full-array BlockSpec with a constant index map (weight fetched once)."""
    nd = arr.ndim
    return pl.BlockSpec(arr.shape, lambda b: (0,) * nd)


def _ln_rows(x, w, b, eps):
    """Row-wise LayerNorm with fused affine (in-kernel helper)."""
    mu = jnp.mean(x, axis=-1, keepdims=True)
    xc = x - mu
    var = jnp.mean(xc * xc, axis=-1, keepdims=True)
    return xc * lax.rsqrt(var + eps) * w + b


def _token_shift(xln, shift_row):
    """xprev[t] = xln[t-1] for t>0, shift_row for t==0 (tiny MXU shift matrix)."""
    t_sz, c_sz = xln.shape
    ri = lax.broadcasted_iota(jnp.int32, (t_sz, t_sz), 0)
    ci = lax.broadcasted_iota(jnp.int32, (t_sz, t_sz), 1)
    smat = (ri == ci + 1).astype(jnp.float32)
    xprev = jnp.dot(smat, xln, preferred_element_type=jnp.float32)
    row0 = lax.broadcasted_iota(jnp.int32, (t_sz, c_sz), 0) == 0
    return jnp.where(row0, jnp.broadcast_to(shift_row, (t_sz, c_sz)), xprev)


# ------------------------------- Pallas kernels --------------------------------
def _time_mix_kernel(x_ref, shift_ref, s0_ref, vecs_ref,
                     maa_w1_ref, maa_w2_ref, dec_w1_ref, dec_w2_ref,
                     wr_ref, wk_ref, wv_ref, wg_ref, wo_ref,
                     hb_ref, gh_ref, eh_ref,
                     xout_ref, shift_out_ref, sT_ref,
                     y_scr, *, ln_eps, gn_eps):
    x = x_ref[...]                                   # (T, C) residual input
    T, C = x.shape
    vecs = vecs_ref[...]
    ln1_w, ln1_b = vecs[0:1, :], vecs[1:2, :]
    maa_x, maa_w = vecs[2:3, :], vecs[3:4, :]
    maa_k, maa_v = vecs[4:5, :], vecs[5:6, :]
    maa_r, maa_g = vecs[6:7, :], vecs[7:8, :]
    t_decay, u_row = vecs[8:9, :], vecs[9:10, :]
    lnx_w, lnx_b = vecs[10:11, :], vecs[11:12, :]

    # --- ln1 + token shift (shift state = ln1'd last token) ---
    xln = _ln_rows(x, ln1_w, ln1_b, ln_eps)
    xx = _token_shift(xln, shift_ref[...]) - xln

    # --- data-dependent mixing (LoRA): tanh(x@W1) then five dense W2 dots ---
    xxx = xln + xx * maa_x
    hid = jnp.tanh(jnp.dot(_bf16(xxx), maa_w1_ref[...],
                           preferred_element_type=jnp.float32))      # (T, 5D)
    d = maa_w2_ref.shape[0] // 5

    def mix(j):
        w2_j = maa_w2_ref[pl.ds(j * d, d), :]                        # (D, C) ref slice
        return jnp.dot(_bf16(hid[:, j * d:(j + 1) * d]), w2_j,
                       preferred_element_type=jnp.float32)

    mw, mk, mv, mr, mg = mix(0), mix(1), mix(2), mix(3), mix(4)      # order [w,k,v,r,g]

    xw = xln + xx * (maa_w + mw)
    xk = xln + xx * (maa_k + mk)
    xv = xln + xx * (maa_v + mv)
    xr = xln + xx * (maa_r + mr)
    xg = xln + xx * (maa_g + mg)

    # --- projections + decay (separate dense dots, no block-diag zero padding) ---
    r = jnp.dot(_bf16(xr), wr_ref[...], preferred_element_type=jnp.float32)
    k = jnp.dot(_bf16(xk), wk_ref[...], preferred_element_type=jnp.float32)
    v = jnp.dot(_bf16(xv), wv_ref[...], preferred_element_type=jnp.float32)
    g = jnp.dot(_bf16(xg), wg_ref[...], preferred_element_type=jnp.float32)
    dd = jnp.tanh(jnp.dot(_bf16(xw), dec_w1_ref[...],
                          preferred_element_type=jnp.float32))
    wdec = t_decay + jnp.dot(_bf16(dd), dec_w2_ref[...],
                             preferred_element_type=jnp.float32)
    wd = jnp.exp(-jnp.exp(wdec))                     # decay in (0,1), hoisted

    # --- WKV6 recurrence on a lane-dense block-diagonal state ---
    # S[c_j, c_i] = S[head, i, j] when head(c_j)==head(c_i), else 0.
    hb = hb_ref[...]                                 # (C, C) same-head mask
    bonus = v * jnp.dot(r * u_row * k, hb, preferred_element_type=jnp.float32)
    kT = k.T                                         # (C, T) key columns
    wdT = wd.T                                       # (C, T) decay columns
    S = s0_ref[...]                                  # (C, C)
    # TODO(synk): for real ctx_len switch this static unroll to the chunked
    # linear-attention form (Tc x Tc MXU matmuls + one state update per chunk).
    for t in range(T):
        y_scr[pl.ds(t, 1), :] = jnp.dot(r[t:t + 1, :], S,
                                        preferred_element_type=jnp.float32)
        S = S * wdT[:, t:t + 1] + (kT[:, t:t + 1] * v[t:t + 1, :]) * hb
    sT_ref[...] = S
    y = y_scr[...] + bonus                           # (T, C)

    # --- GroupNorm (ln_x) with skinny per-head stat matmuls ---
    gh = gh_ref[...]                                 # (C, H) head selector
    eh = eh_ref[...]                                 # (H, C) broadcast-back
    inv_n = 1.0 / (C // gh.shape[-1])
    mean_b = jnp.dot(jnp.dot(y, gh, preferred_element_type=jnp.float32) * inv_n,
                     eh, preferred_element_type=jnp.float32)
    yc = y - mean_b
    var_b = jnp.dot(jnp.dot(yc * yc, gh, preferred_element_type=jnp.float32) * inv_n,
                    eh, preferred_element_type=jnp.float32)
    yn = yc * lax.rsqrt(var_b + gn_eps) * lnx_w + lnx_b

    # --- silu(g) gating + output projection + residual add ---
    gated = yn * (g * jax.nn.sigmoid(g))
    att = jnp.dot(_bf16(gated), wo_ref[...], preferred_element_type=jnp.float32)
    xout_ref[...] = x + att
    shift_out_ref[...] = xln[T - 1:T, :]


def pallas_time_mix(att, consts, x, shift, s_bd):
    B, T, C = x.shape
    kernel = functools.partial(_time_mix_kernel, ln_eps=LN_EPS, gn_eps=GN_EPS)
    seq_spec = pl.BlockSpec((None, T, C), lambda b: (b, 0, 0))
    vec_spec = pl.BlockSpec((1, C), lambda b: (b, 0))
    st_spec = pl.BlockSpec((None, C, C), lambda b: (b, 0, 0))
    return pl.pallas_call(
        kernel,
        out_shape=(jax.ShapeDtypeStruct((B, T, C), jnp.float32),
                   jax.ShapeDtypeStruct((B, C), jnp.float32),
                   jax.ShapeDtypeStruct((B, C, C), jnp.float32)),
        grid=(B,),
        in_specs=[seq_spec, vec_spec, st_spec,
                  _const_spec(att['vecs']),
                  _const_spec(att['maa_w1']), _const_spec(att['maa_w2']),
                  _const_spec(att['decay_w1']), _const_spec(att['decay_w2']),
                  _const_spec(att['wr']), _const_spec(att['wk']),
                  _const_spec(att['wv']), _const_spec(att['wg']),
                  _const_spec(att['wo']),
                  _const_spec(consts['hb']), _const_spec(consts['gh']),
                  _const_spec(consts['eh'])],
        out_specs=(seq_spec, vec_spec, st_spec),
        scratch_shapes=[pltpu.VMEM((T, C), jnp.float32)],
        compiler_params=pltpu.CompilerParams(dimension_semantics=("parallel",)),
    )(x, shift, s_bd, att['vecs'], att['maa_w1'], att['maa_w2'],
      att['decay_w1'], att['decay_w2'], att['wr'], att['wk'], att['wv'],
      att['wg'], att['wo'], consts['hb'], consts['gh'], consts['eh'])


def _channel_mix_kernel(x_ref, shift_ref, vecs_ref, wk_ref, wv_ref, wr_ref,
                        xout_ref, shift_out_ref, *, ln_eps):
    x = x_ref[...]                                   # (T, C) residual input
    T, C = x.shape
    vecs = vecs_ref[...]
    ln_w, ln_b = vecs[0:1, :], vecs[1:2, :]
    maa_k, maa_r = vecs[2:3, :], vecs[3:4, :]
    xln = _ln_rows(x, ln_w, ln_b, ln_eps)
    xx = _token_shift(xln, shift_ref[...]) - xln
    xk = xln + xx * maa_k
    xr = xln + xx * maa_r
    kk = jnp.dot(_bf16(xk), wk_ref[...], preferred_element_type=jnp.float32)
    kk = jnp.square(jnp.maximum(kk, 0.0))            # relu(.)^2
    kv = jnp.dot(_bf16(kk), wv_ref[...], preferred_element_type=jnp.float32)
    rr = jax.nn.sigmoid(jnp.dot(_bf16(xr), wr_ref[...],
                                preferred_element_type=jnp.float32))
    xout_ref[...] = x + rr * kv
    shift_out_ref[...] = xln[T - 1:T, :]


def pallas_channel_mix(ffn, x, shift):
    B, T, C = x.shape
    kernel = functools.partial(_channel_mix_kernel, ln_eps=LN_EPS)
    seq_spec = pl.BlockSpec((None, T, C), lambda b: (b, 0, 0))
    vec_spec = pl.BlockSpec((1, C), lambda b: (b, 0))
    return pl.pallas_call(
        kernel,
        out_shape=(jax.ShapeDtypeStruct((B, T, C), jnp.float32),
                   jax.ShapeDtypeStruct((B, C), jnp.float32)),
        grid=(B,),
        in_specs=[seq_spec, vec_spec, _const_spec(ffn['vecs']),
                  _const_spec(ffn['wk']), _const_spec(ffn['wv']),
                  _const_spec(ffn['wr'])],
        out_specs=(seq_spec, vec_spec),
        compiler_params=pltpu.CompilerParams(dimension_semantics=("parallel",)),
    )(x, shift, ffn['vecs'], ffn['wk'], ffn['wv'], ffn['wr'])


def _head_kernel(x_ref, vecs_ref, w_ref, o_ref, *, ln_eps):
    x = x_ref[...]
    vecs = vecs_ref[...]
    xln = _ln_rows(x, vecs[0:1, :], vecs[1:2, :], ln_eps)
    o_ref[...] = jnp.dot(_bf16(xln), w_ref[...], preferred_element_type=jnp.float32)


def pallas_head(vecs, w, x):
    B, T, C = x.shape
    V = w.shape[1]
    kernel = functools.partial(_head_kernel, ln_eps=LN_EPS)
    return pl.pallas_call(
        kernel,
        out_shape=jax.ShapeDtypeStruct((B, T, V), jnp.float32),
        grid=(B,),
        in_specs=[pl.BlockSpec((None, T, C), lambda b: (b, 0, 0)),
                  _const_spec(vecs), _const_spec(w)],
        out_specs=pl.BlockSpec((None, T, V), lambda b: (b, 0, 0)),
        compiler_params=pltpu.CompilerParams(dimension_semantics=("parallel",)),
    )(x, vecs, w)


# ------------------------- state layout conversion (XLA, tiny) -----------------
def wkv_to_blockdiag(wkv):
    """(B, H, N, N) S[b,h,i,j] -> (B, C, C) block-diag S_bd[b, h*N+j, h*N+i]."""
    B = wkv.shape[0]
    out = jnp.zeros((B, N_EMBD, N_EMBD), jnp.float32)
    for h in range(N_HEAD):
        lo, hi = h * HEAD_SIZE, (h + 1) * HEAD_SIZE
        out = out.at[:, lo:hi, lo:hi].set(jnp.swapaxes(wkv[:, h], 1, 2))
    return out


def blockdiag_to_wkv(s_bd):
    blocks = []
    for h in range(N_HEAD):
        lo, hi = h * HEAD_SIZE, (h + 1) * HEAD_SIZE
        blocks.append(jnp.swapaxes(s_bd[:, lo:hi, lo:hi], 1, 2))
    return jnp.stack(blocks, axis=1)


# ------------------------------- model (glue) ----------------------------------
def rwkv_forward(params, idx, shift_states, wkv_states):
    """idx: (B, T) int32; returns (logits (B, T, VOCAB), (shift_states, wkv_states))."""
    x = params['emb'][idx]            # embedding gather (XLA); ln0 pre-folded into table
    consts = params['consts']
    new_shift, new_wkv = [], []
    for i in range(N_LAYER):
        blk = params['blocks'][i]
        s_bd = wkv_to_blockdiag(wkv_states[i])
        x, att_shift, s_bd = pallas_time_mix(blk['att'], consts, x,
                                             shift_states[i, 0], s_bd)
        x, ffn_shift = pallas_channel_mix(blk['ffn'], x, shift_states[i, 1])
        new_shift.append(jnp.stack([att_shift, ffn_shift], axis=0))
        new_wkv.append(blockdiag_to_wkv(s_bd))
    logits = pallas_head(params['head_vecs'], params['head'], x)
    return logits, (jnp.stack(new_shift), jnp.stack(new_wkv))


# --------------------------- deterministic param init --------------------------
def init_params(key):
    keys = iter(jax.random.split(key, 512))
    C, H, N = N_EMBD, N_HEAD, HEAD_SIZE

    def nrm(shape, scale=0.1):
        return scale * jax.random.normal(next(keys), shape, dtype=jnp.float32)

    ones = jnp.ones((C,), jnp.float32)
    zeros = jnp.zeros((C,), jnp.float32)

    def att_params():
        vecs = jnp.stack([
            ones, zeros,                       # ln1 w, b
            nrm((C,)), nrm((C,)), nrm((C,)),   # time_maa_x, time_maa_w, time_maa_k
            nrm((C,)), nrm((C,)), nrm((C,)),   # time_maa_v, time_maa_r, time_maa_g
            nrm((C,)) - 1.0,                   # time_decay
            nrm((C,)),                         # time_faaaa (u), flattened (H, N)
            ones, zeros,                       # ln_x (GroupNorm) w, b
        ], axis=0)
        # NOTE: with real checkpoints, maa_w2 row-block order must match torch's
        # unbind(0) order [w,k,v,r,g] and wr/wk/wv/wg must match the xr/xk/xv/xg order.
        return {
            'vecs': vecs,
            'maa_w1': _bf16(nrm((C, 5 * D_MIX))),
            'maa_w2': _bf16(nrm((5 * D_MIX, C))),
            'decay_w1': _bf16(nrm((C, D_DECAY))),
            'decay_w2': _bf16(nrm((D_DECAY, C))),
            'wr': _bf16(nrm((C, C))),
            'wk': _bf16(nrm((C, C))),
            'wv': _bf16(nrm((C, C))),
            'wg': _bf16(nrm((C, C))),
            'wo': _bf16(nrm((C, C))),
        }

    def ffn_params():
        vecs = jnp.stack([ones, zeros, nrm((C,)), nrm((C,))], axis=0)
        return {
            'vecs': vecs,
            'wk': _bf16(nrm((C, DIM_FFN))),    # pre-transposed (in, out)
            'wv': _bf16(nrm((DIM_FFN, C))),
            'wr': _bf16(nrm((C, C))),
        }

    blocks = [{'att': att_params(), 'ffn': ffn_params()} for _ in range(N_LAYER)]

    # Per-head selector constants for the fused GroupNorm / WKV kernels.
    head_of = jnp.arange(C) // N
    hb = (head_of[:, None] == head_of[None, :]).astype(jnp.float32)       # (C, C)
    gh = (head_of[:, None] == jnp.arange(H)[None, :]).astype(jnp.float32)  # (C, H)
    consts = {'hb': hb, 'gh': gh, 'eh': gh.T}

    # ln0 folded into the embedding table (exact: LayerNorm acts row-wise).
    emb = nrm((VOCAB, C))
    ln0_w, ln0_b = ones, zeros
    mu = jnp.mean(emb, axis=-1, keepdims=True)
    var = jnp.mean((emb - mu) ** 2, axis=-1, keepdims=True)
    emb_ln0 = (emb - mu) * lax.rsqrt(var + LN_EPS) * ln0_w + ln0_b

    return {
        'emb': emb_ln0,
        'blocks': blocks,
        'consts': consts,
        'head_vecs': jnp.stack([ones, zeros], axis=0),   # ln_out w, b
        'head': _bf16(nrm((C, VOCAB))),                  # pre-transposed (in, out)
    }


# ------------------------------------ main --------------------------------------
if __name__ == "__main__":
    key = jax.random.PRNGKey(0)
    pkey, ikey = jax.random.split(key)
    params = init_params(pkey)

    B, T = 1, SEQ_LEN  # RWKV.forward wraps the token list -> batch of 1
    idx = jax.random.randint(ikey, (B, T), 0, VOCAB, dtype=jnp.int32)

    # BlockStateList.create equivalent: zero-initialized shift + wkv states.
    shift_states = jnp.zeros((N_LAYER, 2, B, N_EMBD), jnp.float32)
    wkv_states = jnp.zeros((N_LAYER, B, N_HEAD, HEAD_SIZE, HEAD_SIZE), jnp.float32)

    fwd = jax.jit(rwkv_forward)
    logits, (new_shift, new_wkv) = fwd(params, idx, shift_states, wkv_states)
    jax.block_until_ready((logits, new_shift, new_wkv))

    assert logits.shape == (B, T, VOCAB)
    assert new_shift.shape == (N_LAYER, 2, B, N_EMBD)
    assert new_wkv.shape == (N_LAYER, B, N_HEAD, HEAD_SIZE, HEAD_SIZE)
    assert bool(jnp.all(jnp.isfinite(logits)))
    print("KERNEL_OK")
</pallas_src>

<mosaic_0001>
module attributes {stable_mosaic.version = 11 : i64} {
  func.func @_time_mix_kernel(%arg0: i32, %arg1: memref<1x8x32xf32, #tpu.memory_space<vmem>>, %arg2: memref<1x32xf32, #tpu.memory_space<vmem>>, %arg3: memref<1x32x32xf32, #tpu.memory_space<vmem>>, %arg4: memref<12x32xf32, #tpu.memory_space<vmem>>, %arg5: memref<32x80xbf16, #tpu.memory_space<vmem>>, %arg6: memref<80x32xbf16, #tpu.memory_space<vmem>>, %arg7: memref<32x16xbf16, #tpu.memory_space<vmem>>, %arg8: memref<16x32xbf16, #tpu.memory_space<vmem>>, %arg9: memref<32x32xbf16, #tpu.memory_space<vmem>>, %arg10: memref<32x32xbf16, #tpu.memory_space<vmem>>, %arg11: memref<32x32xbf16, #tpu.memory_space<vmem>>, %arg12: memref<32x32xbf16, #tpu.memory_space<vmem>>, %arg13: memref<32x32xbf16, #tpu.memory_space<vmem>>, %arg14: memref<32x32xf32, #tpu.memory_space<vmem>>, %arg15: memref<32x4xf32, #tpu.memory_space<vmem>>, %arg16: memref<4x32xf32, #tpu.memory_space<vmem>>, %arg17: memref<1x8x32xf32, #tpu.memory_space<vmem>>, %arg18: memref<1x32xf32, #tpu.memory_space<vmem>>, %arg19: memref<1x32x32xf32, #tpu.memory_space<vmem>>, %arg20: memref<8x32xf32, #tpu.memory_space<vmem>>) attributes {dimension_semantics = [#tpu.dimension_semantics<parallel>], iteration_bounds = array<i64: 1>, scalar_prefetch = 0 : i64, scratch_operands = 1 : i64, tpu.core_type = #tpu.core_type<tc>, window_params = [{transform_indices = @transform_0, window_bounds = array<i64: 1, 8, 32>}, {transform_indices = @transform_1, window_bounds = array<i64: 1, 32>}, {transform_indices = @transform_2, window_bounds = array<i64: 1, 32, 32>}, {pipeline_mode = #tpu.pipeline_mode<synchronous>, transform_indices = @transform_3, window_bounds = array<i64: 12, 32>}, {pipeline_mode = #tpu.pipeline_mode<synchronous>, transform_indices = @transform_4, window_bounds = array<i64: 32, 80>}, {pipeline_mode = #tpu.pipeline_mode<synchronous>, transform_indices = @transform_5, window_bounds = array<i64: 80, 32>}, {pipeline_mode = #tpu.pipeline_mode<synchronous>, transform_indices = @transform_6, window_bounds = array<i64: 32, 16>}, {pipeline_mode = #tpu.pipeline_mode<synchronous>, transform_indices = @transform_7, window_bounds = array<i64: 16, 32>}, {pipeline_mode = #tpu.pipeline_mode<synchronous>, transform_indices = @transform_8, window_bounds = array<i64: 32, 32>}, {pipeline_mode = #tpu.pipeline_mode<synchronous>, transform_indices = @transform_9, window_bounds = array<i64: 32, 32>}, {pipeline_mode = #tpu.pipeline_mode<synchronous>, transform_indices = @transform_10, window_bounds = array<i64: 32, 32>}, {pipeline_mode = #tpu.pipeline_mode<synchronous>, transform_indices = @transform_11, window_bounds = array<i64: 32, 32>}, {pipeline_mode = #tpu.pipeline_mode<synchronous>, transform_indices = @transform_12, window_bounds = array<i64: 32, 32>}, {pipeline_mode = #tpu.pipeline_mode<synchronous>, transform_indices = @transform_13, window_bounds = array<i64: 32, 32>}, {pipeline_mode = #tpu.pipeline_mode<synchronous>, transform_indices = @transform_14, window_bounds = array<i64: 32, 4>}, {pipeline_mode = #tpu.pipeline_mode<synchronous>, transform_indices = @transform_15, window_bounds = array<i64: 4, 32>}, {transform_indices = @transform_16, window_bounds = array<i64: 1, 8, 32>}, {transform_indices = @transform_17, window_bounds = array<i64: 1, 32>}, {transform_indices = @transform_18, window_bounds = array<i64: 1, 32, 32>}]} {
    %c0 = arith.constant 0 : index
    %c0_0 = arith.constant 0 : index
    %c0_1 = arith.constant 0 : index
    %0 = vector.load %arg1[%c0, %c0_0, %c0_1] : memref<1x8x32xf32, #tpu.memory_space<vmem>>, vector<1x8x32xf32>
    %1 = vector.shape_cast %0 : vector<1x8x32xf32> to vector<8x32xf32>
    %c0_2 = arith.constant 0 : index
    %c0_3 = arith.constant 0 : index
    %2 = vector.load %arg4[%c0_2, %c0_3] : memref<12x32xf32, #tpu.memory_space<vmem>>, vector<12x32xf32>
    %3 = vector.extract_strided_slice %2 {offsets = [0, 0], sizes = [1, 32], strides = [1, 1]} : vector<12x32xf32> to vector<1x32xf32>
    %4 = vector.extract_strided_slice %2 {offsets = [1, 0], sizes = [1, 32], strides = [1, 1]} : vector<12x32xf32> to vector<1x32xf32>
    %5 = vector.extract_strided_slice %2 {offsets = [2, 0], sizes = [1, 32], strides = [1, 1]} : vector<12x32xf32> to vector<1x32xf32>
    %6 = vector.extract_strided_slice %2 {offsets = [3, 0], sizes = [1, 32], strides = [1, 1]} : vector<12x32xf32> to vector<1x32xf32>
    %7 = vector.extract_strided_slice %2 {offsets = [4, 0], sizes = [1, 32], strides = [1, 1]} : vector<12x32xf32> to vector<1x32xf32>
    %8 = vector.extract_strided_slice %2 {offsets = [5, 0], sizes = [1, 32], strides = [1, 1]} : vector<12x32xf32> to vector<1x32xf32>
    %9 = vector.extract_strided_slice %2 {offsets = [6, 0], sizes = [1, 32], strides = [1, 1]} : vector<12x32xf32> to vector<1x32xf32>
    %10 = vector.extract_strided_slice %2 {offsets = [7, 0], sizes = [1, 32], strides = [1, 1]} : vector<12x32xf32> to vector<1x32xf32>
    %11 = vector.extract_strided_slice %2 {offsets = [8, 0], sizes = [1, 32], strides = [1, 1]} : vector<12x32xf32> to vector<1x32xf32>
    %12 = vector.extract_strided_slice %2 {offsets = [9, 0], sizes = [1, 32], strides = [1, 1]} : vector<12x32xf32> to vector<1x32xf32>
    %13 = vector.extract_strided_slice %2 {offsets = [10, 0], sizes = [1, 32], strides = [1, 1]} : vector<12x32xf32> to vector<1x32xf32>
    %14 = vector.extract_strided_slice %2 {offsets = [11, 0], sizes = [1, 32], strides = [1, 1]} : vector<12x32xf32> to vector<1x32xf32>
    %cst = arith.constant dense<0.000000e+00> : vector<8xf32>
    %15 = vector.multi_reduction <add>, %1, %cst [1] : vector<8x32xf32> to vector<8xf32>
    %16 = vector.shape_cast %15 : vector<8xf32> to vector<8x1xf32>
    %cst_4 = arith.constant 3.200000e+01 : f32
    %17 = vector.broadcast %cst_4 : f32 to vector<8x1xf32>
    %18 = arith.divf %16, %17 : vector<8x1xf32>
    %19 = vector.broadcast %18 : vector<8x1xf32> to vector<8x32xf32>
    %20 = arith.subf %1, %19 : vector<8x32xf32>
    %21 = arith.mulf %20, %20 : vector<8x32xf32>
    %cst_5 = arith.constant dense<0.000000e+00> : vector<8xf32>
    %22 = vector.multi_reduction <add>, %21, %cst_5 [1] : vector<8x32xf32> to vector<8xf32>
    %23 = vector.shape_cast %22 : vector<8xf32> to vector<8x1xf32>
    %cst_6 = arith.constant 3.200000e+01 : f32
    %24 = vector.broadcast %cst_6 : f32 to vector<8x1xf32>
    %25 = arith.divf %23, %24 : vector<8x1xf32>
    %cst_7 = arith.constant 9.99999974E-6 : f32
    %26 = vector.broadcast %cst_7 : f32 to vector<8x1xf32>
    %27 = arith.addf %25, %26 : vector<8x1xf32>
    %28 = math.rsqrt %27 : vector<8x1xf32>
    %29 = vector.broadcast %28 : vector<8x1xf32> to vector<8x32xf32>
    %30 = arith.mulf %20, %29 : vector<8x32xf32>
    %31 = vector.broadcast %3 : vector<1x32xf32> to vector<8x32xf32>
    %32 = arith.mulf %30, %31 : vector<8x32xf32>
    %33 = vector.broadcast %4 : vector<1x32xf32> to vector<8x32xf32>
    %34 = arith.addf %32, %33 : vector<8x32xf32>
    %c0_8 = arith.constant 0 : index
    %c0_9 = arith.constant 0 : index
    %35 = vector.load %arg2[%c0_8, %c0_9] : memref<1x32xf32, #tpu.memory_space<vmem>>, vector<1x32xf32>
    %36 = tpu.iota {dimensions = array<i32: 0>} : vector<8x8xi32>
    %37 = tpu.iota {dimensions = array<i32: 1>} : vector<8x8xi32>
    %c1_i32 = arith.constant 1 : i32
    %38 = vector.broadcast %c1_i32 : i32 to vector<8x8xi32>
    %39 = arith.addi %37, %38 : vector<8x8xi32>
    %40 = arith.cmpi eq, %36, %39 : vector<8x8xi32>
    %41 = arith.extui %40 : vector<8x8xi1> to vector<8x8xi32>
    %42 = arith.sitofp %41 : vector<8x8xi32> to vector<8x8xf32>
    %cst_10 = arith.constant dense<0.000000e+00> : vector<8x32xf32>
    %43 = tpu.matmul %42, %34, %cst_10 {dimension_numbers = #tpu.dot_dimension_numbers<[1], [0], [0], [1], [0, 0, 1, 1], [], []>} : vector<8x8xf32>, vector<8x32xf32>, vector<8x32xf32> -> vector<8x32xf32>
    %44 = tpu.iota {dimensions = array<i32: 0>} : vector<8x32xi32>
    %c0_i32 = arith.constant 0 : i32
    %45 = vector.broadcast %c0_i32 : i32 to vector<8x32xi32>
    %46 = arith.cmpi eq, %44, %45 : vector<8x32xi32>
    %47 = vector.shape_cast %35 : vector<1x32xf32> to vector<1x32xf32>
    %48 = vector.broadcast %47 : vector<1x32xf32> to vector<8x32xf32>
    %49 = arith.select %46, %48, %43 : vector<8x32xi1>, vector<8x32xf32>
    %50 = arith.subf %49, %34 : vector<8x32xf32>
    %51 = vector.broadcast %5 : vector<1x32xf32> to vector<8x32xf32>
    %52 = arith.mulf %50, %51 : vector<8x32xf32>
    %53 = arith.addf %34, %52 : vector<8x32xf32>
    %54 = arith.truncf %53 : vector<8x32xf32> to vector<8x32xbf16>
    %c0_11 = arith.constant 0 : index
    %c0_12 = arith.constant 0 : index
    %55 = vector.load %arg5[%c0_11, %c0_12] : memref<32x80xbf16, #tpu.memory_space<vmem>>, vector<32x80xbf16>
    %cst_13 = arith.constant dense<0.000000e+00> : vector<8x80xf32>
    %56 = tpu.matmul %54, %55, %cst_13 {dimension_numbers = #tpu.dot_dimension_numbers<[1], [0], [0], [1], [0, 0, 1, 1], [], []>} : vector<8x32xbf16>, vector<32x80xbf16>, vector<8x80xf32> -> vector<8x80xf32>
    %57 = math.tanh %56 : vector<8x80xf32>
    %c0_14 = arith.constant 0 : index
    %c0_15 = arith.constant 0 : index
    %58 = vector.load %arg6[%c0_14, %c0_15] : memref<80x32xbf16, #tpu.memory_space<vmem>>, vector<16x32xbf16>
    %59 = vector.extract_strided_slice %57 {offsets = [0, 0], sizes = [8, 16], strides = [1, 1]} : vector<8x80xf32> to vector<8x16xf32>
    %60 = arith.truncf %59 : vector<8x16xf32> to vector<8x16xbf16>
    %cst_16 = arith.constant dense<0.000000e+00> : vector<8x32xf32>
    %61 = tpu.matmul %60, %58, %cst_16 {dimension_numbers = #tpu.dot_dimension_numbers<[1], [0], [0], [1], [0, 0, 1, 1], [], []>} : vector<8x16xbf16>, vector<16x32xbf16>, vector<8x32xf32> -> vector<8x32xf32>
    %c16 = arith.constant 16 : index
    %c0_17 = arith.constant 0 : index
    %62 = vector.load %arg6[%c16, %c0_17] : memref<80x32xbf16, #tpu.memory_space<vmem>>, vector<16x32xbf16>
    %63 = vector.extract_strided_slice %57 {offsets = [0, 16], sizes = [8, 16], strides = [1, 1]} : vector<8x80xf32> to vector<8x16xf32>
    %64 = arith.truncf %63 : vector<8x16xf32> to vector<8x16xbf16>
    %cst_18 = arith.constant dense<0.000000e+00> : vector<8x32xf32>
    %65 = tpu.matmul %64, %62, %cst_18 {dimension_numbers = #tpu.dot_dimension_numbers<[1], [0], [0], [1], [0, 0, 1, 1], [], []>} : vector<8x16xbf16>, vector<16x32xbf16>, vector<8x32xf32> -> vector<8x32xf32>
    %c32 = arith.constant 32 : index
    %c0_19 = arith.constant 0 : index
    %66 = vector.load %arg6[%c32, %c0_19] : memref<80x32xbf16, #tpu.memory_space<vmem>>, vector<16x32xbf16>
    %67 = vector.extract_strided_slice %57 {offsets = [0, 32], sizes = [8, 16], strides = [1, 1]} : vector<8x80xf32> to vector<8x16xf32>
    %68 = arith.truncf %67 : vector<8x16xf32> to vector<8x16xbf16>
    %cst_20 = arith.constant dense<0.000000e+00> : vector<8x32xf32>
    %69 = tpu.matmul %68, %66, %cst_20 {dimension_numbers = #tpu.dot_dimension_numbers<[1], [0], [0], [1], [0, 0, 1, 1], [], []>} : vector<8x16xbf16>, vector<16x32xbf16>, vector<8x32xf32> -> vector<8x32xf32>
    %c48 = arith.constant 48 : index
    %c0_21 = arith.constant 0 : index
    %70 = vector.load %arg6[%c48, %c0_21] : memref<80x32xbf16, #tpu.memory_space<vmem>>, vector<16x32xbf16>
    %71 = vector.extract_strided_slice %57 {offsets = [0, 48], sizes = [8, 16], strides = [1, 1]} : vector<8x80xf32> to vector<8x16xf32>
    %72 = arith.truncf %71 : vector<8x16xf32> to vector<8x16xbf16>
    %cst_22 = arith.constant dense<0.000000e+00> : vector<8x32xf32>
    %73 = tpu.matmul %72, %70, %cst_22 {dimension_numbers = #tpu.dot_dimension_numbers<[1], [0], [0], [1], [0, 0, 1, 1], [], []>} : vector<8x16xbf16>, vector<16x32xbf16>, vector<8x32xf32> -> vector<8x32xf32>
    %c64 = arith.constant 64 : index
    %c0_23 = arith.constant 0 : index
    %74 = vector.load %arg6[%c64, %c0_23] : memref<80x32xbf16, #tpu.memory_space<vmem>>, vector<16x32xbf16>
    %75 = vector.extract_strided_slice %57 {offsets = [0, 64], sizes = [8, 16], strides = [1, 1]} : vector<8x80xf32> to vector<8x16xf32>
    %76 = arith.truncf %75 : vector<8x16xf32> to vector<8x16xbf16>
    %cst_24 = arith.constant dense<0.000000e+00> : vector<8x32xf32>
    %77 = tpu.matmul %76, %74, %cst_24 {dimension_numbers = #tpu.dot_dimension_numbers<[1], [0], [0], [1], [0, 0, 1, 1], [], []>} : vector<8x16xbf16>, vector<16x32xbf16>, vector<8x32xf32> -> vector<8x32xf32>
    %78 = vector.broadcast %6 : vector<1x32xf32> to vector<8x32xf32>
    %79 = arith.addf %78, %61 : vector<8x32xf32>
    %80 = arith.mulf %50, %79 : vector<8x32xf32>
    %81 = arith.addf %34, %80 : vector<8x32xf32>
    %82 = vector.broadcast %7 : vector<1x32xf32> to vector<8x32xf32>
    %83 = arith.addf %82, %65 : vector<8x32xf32>
    %84 = arith.mulf %50, %83 : vector<8x32xf32>
    %85 = arith.addf %34, %84 : vector<8x32xf32>
    %86 = vector.broadcast %8 : vector<1x32xf32> to vector<8x32xf32>
    %87 = arith.addf %86, %69 : vector<8x32xf32>
    %88 = arith.mulf %50, %87 : vector<8x32xf32>
    %89 = arith.addf %34, %88 : vector<8x32xf32>
    %90 = vector.broadcast %9 : vector<1x32xf32> to vector<8x32xf32>
    %91 = arith.addf %90, %73 : vector<8x32xf32>
    %92 = arith.mulf %50, %91 : vector<8x32xf32>
    %93 = arith.addf %34, %92 : vector<8x32xf32>
    %94 = vector.broadcast %10 : vector<1x32xf32> to vector<8x32xf32>
    %95 = arith.addf %94, %77 : vector<8x32xf32>
    %96 = arith.mulf %50, %95 : vector<8x32xf32>
    %97 = arith.addf %34, %96 : vector<8x32xf32>
    %98 = arith.truncf %93 : vector<8x32xf32> to vector<8x32xbf16>
    %c0_25 = arith.constant 0 : index
    %c0_26 = arith.constant 0 : index
    %99 = vector.load %arg9[%c0_25, %c0_26] : memref<32x32xbf16, #tpu.memory_space<vmem>>, vector<32x32xbf16>
    %cst_27 = arith.constant dense<0.000000e+00> : vector<8x32xf32>
    %100 = tpu.matmul %98, %99, %cst_27 {dimension_numbers = #tpu.dot_dimension_numbers<[1], [0], [0], [1], [0, 0, 1, 1], [], []>} : vector<8x32xbf16>, vector<32x32xbf16>, vector<8x32xf32> -> vector<8x32xf32>
    %101 = arith.truncf %85 : vector<8x32xf32> to vector<8x32xbf16>
    %c0_28 = arith.constant 0 : index
    %c0_29 = arith.constant 0 : index
    %102 = vector.load %arg10[%c0_28, %c0_29] : memref<32x32xbf16, #tpu.memory_space<vmem>>, vector<32x32xbf16>
    %cst_30 = arith.constant dense<0.000000e+00> : vector<8x32xf32>
    %103 = tpu.matmul %101, %102, %cst_30 {dimension_numbers = #tpu.dot_dimension_numbers<[1], [0], [0], [1], [0, 0, 1, 1], [], []>} : vector<8x32xbf16>, vector<32x32xbf16>, vector<8x32xf32> -> vector<8x32xf32>
    %104 = arith.truncf %89 : vector<8x32xf32> to vector<8x32xbf16>
    %c0_31 = arith.constant 0 : index
    %c0_32 = arith.constant 0 : index
    %105 = vector.load %arg11[%c0_31, %c0_32] : memref<32x32xbf16, #tpu.memory_space<vmem>>, vector<32x32xbf16>
    %cst_33 = arith.constant dense<0.000000e+00> : vector<8x32xf32>
    %106 = tpu.matmul %104, %105, %cst_33 {dimension_numbers = #tpu.dot_dimension_numbers<[1], [0], [0], [1], [0, 0, 1, 1], [], []>} : vector<8x32xbf16>, vector<32x32xbf16>, vector<8x32xf32> -> vector<8x32xf32>
    %107 = arith.truncf %97 : vector<8x32xf32> to vector<8x32xbf16>
    %c0_34 = arith.constant 0 : index
    %c0_35 = arith.constant 0 : index
    %108 = vector.load %arg12[%c0_34, %c0_35] : memref<32x32xbf16, #tpu.memory_space<vmem>>, vector<32x32xbf16>
    %cst_36 = arith.constant dense<0.000000e+00> : vector<8x32xf32>
    %109 = tpu.matmul %107, %108, %cst_36 {dimension_numbers = #tpu.dot_dimension_numbers<[1], [0], [0], [1], [0, 0, 1, 1], [], []>} : vector<8x32xbf16>, vector<32x32xbf16>, vector<8x32xf32> -> vector<8x32xf32>
    %110 = arith.truncf %81 : vector<8x32xf32> to vector<8x32xbf16>
    %c0_37 = arith.constant 0 : index
    %c0_38 = arith.constant 0 : index
    %111 = vector.load %arg7[%c0_37, %c0_38] : memref<32x16xbf16, #tpu.memory_space<vmem>>, vector<32x16xbf16>
    %cst_39 = arith.constant dense<0.000000e+00> : vector<8x16xf32>
    %112 = tpu.matmul %110, %111, %cst_39 {dimension_numbers = #tpu.dot_dimension_numbers<[1], [0], [0], [1], [0, 0, 1, 1], [], []>} : vector<8x32xbf16>, vector<32x16xbf16>, vector<8x16xf32> -> vector<8x16xf32>
    %113 = math.tanh %112 : vector<8x16xf32>
    %114 = arith.truncf %113 : vector<8x16xf32> to vector<8x16xbf16>
    %c0_40 = arith.constant 0 : index
    %c0_41 = arith.constant 0 : index
    %115 = vector.load %arg8[%c0_40, %c0_41] : memref<16x32xbf16, #tpu.memory_space<vmem>>, vector<16x32xbf16>
    %cst_42 = arith.constant dense<0.000000e+00> : vector<8x32xf32>
    %116 = tpu.matmul %114, %115, %cst_42 {dimension_numbers = #tpu.dot_dimension_numbers<[1], [0], [0], [1], [0, 0, 1, 1], [], []>} : vector<8x16xbf16>, vector<16x32xbf16>, vector<8x32xf32> -> vector<8x32xf32>
    %117 = vector.broadcast %11 : vector<1x32xf32> to vector<8x32xf32>
    %118 = arith.addf %117, %116 : vector<8x32xf32>
    %119 = math.exp %118 : vector<8x32xf32>
    %cst_43 = arith.constant 0.000000e+00 : f32
    %120 = vector.broadcast %cst_43 : f32 to vector<8x32xf32>
    %121 = arith.subf %120, %119 : vector<8x32xf32>
    %122 = math.exp %121 : vector<8x32xf32>
    %c0_44 = arith.constant 0 : index
    %c0_45 = arith.constant 0 : index
    %123 = vector.load %arg14[%c0_44, %c0_45] : memref<32x32xf32, #tpu.memory_space<vmem>>, vector<32x32xf32>
    %124 = vector.broadcast %12 : vector<1x32xf32> to vector<8x32xf32>
    %125 = arith.mulf %100, %124 : vector<8x32xf32>
    %126 = arith.mulf %125, %103 : vector<8x32xf32>
    %cst_46 = arith.constant dense<0.000000e+00> : vector<8x32xf32>
    %127 = tpu.matmul %126, %123, %cst_46 {dimension_numbers = #tpu.dot_dimension_numbers<[1], [0], [0], [1], [0, 0, 1, 1], [], []>} : vector<8x32xf32>, vector<32x32xf32>, vector<8x32xf32> -> vector<8x32xf32>
    %128 = arith.mulf %106, %127 : vector<8x32xf32>
    %129 = tpu.transpose %103, [1, 0] : vector<8x32xf32> -> vector<32x8xf32>
    %130 = tpu.transpose %122, [1, 0] : vector<8x32xf32> -> vector<32x8xf32>
    %c0_47 = arith.constant 0 : index
    %c0_48 = arith.constant 0 : index
    %c0_49 = arith.constant 0 : index
    %131 = vector.load %arg3[%c0_47, %c0_48, %c0_49] : memref<1x32x32xf32, #tpu.memory_space<vmem>>, vector<1x32x32xf32>
    %132 = vector.shape_cast %131 : vector<1x32x32xf32> to vector<32x32xf32>
    %133 = vector.extract_strided_slice %100 {offsets = [0, 0], sizes = [1, 32], strides = [1, 1]} : vector<8x32xf32> to vector<1x32xf32>
    %cst_50 = arith.constant dense<0.000000e+00> : vector<1x32xf32>
    %134 = tpu.matmul %133, %132, %cst_50 {dimension_numbers = #tpu.dot_dimension_numbers<[1], [0], [0], [1], [0, 0, 1, 1], [], []>} : vector<1x32xf32>, vector<32x32xf32>, vector<1x32xf32> -> vector<1x32xf32>
    %c0_51 = arith.constant 0 : index
    %c0_52 = arith.constant 0 : index
    %135 = vector.load %arg20[%c0_51, %c0_52] : memref<8x32xf32, #tpu.memory_space<vmem>>, vector<1x32xf32>
    tpu.vector_store %arg20[%c0_51, %c0_52], %134 {strides = array<i32>} : memref<8x32xf32, #tpu.memory_space<vmem>>, vector<1x32xf32>,
    %136 = vector.extract_strided_slice %130 {offsets = [0, 0], sizes = [32, 1], strides = [1, 1]} : vector<32x8xf32> to vector<32x1xf32>
    %137 = vector.broadcast %136 : vector<32x1xf32> to vector<32x32xf32>
    %138 = arith.mulf %132, %137 : vector<32x32xf32>
    %139 = vector.extract_strided_slice %129 {offsets = [0, 0], sizes = [32, 1], strides = [1, 1]} : vector<32x8xf32> to vector<32x1xf32>
    %140 = vector.extract_strided_slice %106 {offsets = [0, 0], sizes = [1, 32], strides = [1, 1]} : vector<8x32xf32> to vector<1x32xf32>
    %141 = vector.broadcast %139 : vector<32x1xf32> to vector<32x32xf32>
    %142 = vector.broadcast %140 : vector<1x32xf32> to vector<32x32xf32>
    %143 = arith.mulf %141, %142 : vector<32x32xf32>
    %144 = arith.mulf %143, %123 : vector<32x32xf32>
    %145 = arith.addf %138, %144 : vector<32x32xf32>
    %146 = vector.extract_strided_slice %100 {offsets = [1, 0], sizes = [1, 32], strides = [1, 1]} : vector<8x32xf32> to vector<1x32xf32>
    %cst_53 = arith.constant dense<0.000000e+00> : vector<1x32xf32>
    %147 = tpu.matmul %146, %145, %cst_53 {dimension_numbers = #tpu.dot_dimension_numbers<[1], [0], [0], [1], [0, 0, 1, 1], [], []>} : vector<1x32xf32>, vector<32x32xf32>, vector<1x32xf32> -> vector<1x32xf32>
    %c1 = arith.constant 1 : index
    %c0_54 = arith.constant 0 : index
    %148 = vector.load %arg20[%c1, %c0_54] : memref<8x32xf32, #tpu.memory_space<vmem>>, vector<1x32xf32>
    tpu.vector_store %arg20[%c1, %c0_54], %147 {strides = array<i32>} : memref<8x32xf32, #tpu.memory_space<vmem>>, vector<1x32xf32>,
    %149 = vector.extract_strided_slice %130 {offsets = [0, 1], sizes = [32, 1], strides = [1, 1]} : vector<32x8xf32> to vector<32x1xf32>
    %150 = vector.broadcast %149 : vector<32x1xf32> to vector<32x32xf32>
    %151 = arith.mulf %145, %150 : vector<32x32xf32>
    %152 = vector.extract_strided_slice %129 {offsets = [0, 1], sizes = [32, 1], strides = [1, 1]} : vector<32x8xf32> to vector<32x1xf32>
    %153 = vector.extract_strided_slice %106 {offsets = [1, 0], sizes = [1, 32], strides = [1, 1]} : vector<8x32xf32> to vector<1x32xf32>
    %154 = vector.broadcast %152 : vector<32x1xf32> to vector<32x32xf32>
    %155 = vector.broadcast %153 : vector<1x32xf32> to vector<32x32xf32>
    %156 = arith.mulf %154, %155 : vector<32x32xf32>
    %157 = arith.mulf %156, %123 : vector<32x32xf32>
    %158 = arith.addf %151, %157 : vector<32x32xf32>
    %159 = vector.extract_strided_slice %100 {offsets = [2, 0], sizes = [1, 32], strides = [1, 1]} : vector<8x32xf32> to vector<1x32xf32>
    %cst_55 = arith.constant dense<0.000000e+00> : vector<1x32xf32>
    %160 = tpu.matmul %159, %158, %cst_55 {dimension_numbers = #tpu.dot_dimension_numbers<[1], [0], [0], [1], [0, 0, 1, 1], [], []>} : vector<1x32xf32>, vector<32x32xf32>, vector<1x32xf32> -> vector<1x32xf32>
    %c2 = arith.constant 2 : index
    %c0_56 = arith.constant 0 : index
    %161 = vector.load %arg20[%c2, %c0_56] : memref<8x32xf32, #tpu.memory_space<vmem>>, vector<1x32xf32>
    tpu.vector_store %arg20[%c2, %c0_56], %160 {strides = array<i32>} : memref<8x32xf32, #tpu.memory_space<vmem>>, vector<1x32xf32>,
    %162 = vector.extract_strided_slice %130 {offsets = [0, 2], sizes = [32, 1], strides = [1, 1]} : vector<32x8xf32> to vector<32x1xf32>
    %163 = vector.broadcast %162 : vector<32x1xf32> to vector<32x32xf32>
    %164 = arith.mulf %158, %163 : vector<32x32xf32>
    %165 = vector.extract_strided_slice %129 {offsets = [0, 2], sizes = [32, 1], strides = [1, 1]} : vector<32x8xf32> to vector<32x1xf32>
    %166 = vector.extract_strided_slice %106 {offsets = [2, 0], sizes = [1, 32], strides = [1, 1]} : vector<8x32xf32> to vector<1x32xf32>
    %167 = vector.broadcast %165 : vector<32x1xf32> to vector<32x32xf32>
    %168 = vector.broadcast %166 : vector<1x32xf32> to vector<32x32xf32>
    %169 = arith.mulf %167, %168 : vector<32x32xf32>
    %170 = arith.mulf %169, %123 : vector<32x32xf32>
    %171 = arith.addf %164, %170 : vector<32x32xf32>
    %172 = vector.extract_strided_slice %100 {offsets = [3, 0], sizes = [1, 32], strides = [1, 1]} : vector<8x32xf32> to vector<1x32xf32>
    %cst_57 = arith.constant dense<0.000000e+00> : vector<1x32xf32>
    %173 = tpu.matmul %172, %171, %cst_57 {dimension_numbers = #tpu.dot_dimension_numbers<[1], [0], [0], [1], [0, 0, 1, 1], [], []>} : vector<1x32xf32>, vector<32x32xf32>, vector<1x32xf32> -> vector<1x32xf32>
    %c3 = arith.constant 3 : index
    %c0_58 = arith.constant 0 : index
    %174 = vector.load %arg20[%c3, %c0_58] : memref<8x32xf32, #tpu.memory_space<vmem>>, vector<1x32xf32>
    tpu.vector_store %arg20[%c3, %c0_58], %173 {strides = array<i32>} : memref<8x32xf32, #tpu.memory_space<vmem>>, vector<1x32xf32>,
    %175 = vector.extract_strided_slice %130 {offsets = [0, 3], sizes = [32, 1], strides = [1, 1]} : vector<32x8xf32> to vector<32x1xf32>
    %176 = vector.broadcast %175 : vector<32x1xf32> to vector<32x32xf32>
    %177 = arith.mulf %171, %176 : vector<32x32xf32>
    %178 = vector.extract_strided_slice %129 {offsets = [0, 3], sizes = [32, 1], strides = [1, 1]} : vector<32x8xf32> to vector<32x1xf32>
    %179 = vector.extract_strided_slice %106 {offsets = [3, 0], sizes = [1, 32], strides = [1, 1]} : vector<8x32xf32> to vector<1x32xf32>
    %180 = vector.broadcast %178 : vector<32x1xf32> to vector<32x32xf32>
    %181 = vector.broadcast %179 : vector<1x32xf32> to vector<32x32xf32>
    %182 = arith.mulf %180, %181 : vector<32x32xf32>
    %183 = arith.mulf %182, %123 : vector<32x32xf32>
    %184 = arith.addf %177, %183 : vector<32x32xf32>
    %185 = vector.extract_strided_slice %100 {offsets = [4, 0], sizes = [1, 32], strides = [1, 1]} : vector<8x32xf32> to vector<1x32xf32>
    %cst_59 = arith.constant dense<0.000000e+00> : vector<1x32xf32>
    %186 = tpu.matmul %185, %184, %cst_59 {dimension_numbers = #tpu.dot_dimension_numbers<[1], [0], [0], [1], [0, 0, 1, 1], [], []>} : vector<1x32xf32>, vector<32x32xf32>, vector<1x32xf32> -> vector<1x32xf32>
    %c4 = arith.constant 4 : index
    %c0_60 = arith.constant 0 : index
    %187 = vector.load %arg20[%c4, %c0_60] : memref<8x32xf32, #tpu.memory_space<vmem>>, vector<1x32xf32>
    tpu.vector_store %arg20[%c4, %c0_60], %186 {strides = array<i32>} : memref<8x32xf32, #tpu.memory_space<vmem>>, vector<1x32xf32>,
    %188 = vector.extract_strided_slice %130 {offsets = [0, 4], sizes = [32, 1], strides = [1, 1]} : vector<32x8xf32> to vector<32x1xf32>
    %189 = vector.broadcast %188 : vector<32x1xf32> to vector<32x32xf32>
    %190 = arith.mulf %184, %189 : vector<32x32xf32>
    %191 = vector.extract_strided_slice %129 {offsets = [0, 4], sizes = [32, 1], strides = [1, 1]} : vector<32x8xf32> to vector<32x1xf32>
    %192 = vector.extract_strided_slice %106 {offsets = [4, 0], sizes = [1, 32], strides = [1, 1]} : vector<8x32xf32> to vector<1x32xf32>
    %193 = vector.broadcast %191 : vector<32x1xf32> to vector<32x32xf32>
    %194 = vector.broadcast %192 : vector<1x32xf32> to vector<32x32xf32>
    %195 = arith.mulf %193, %194 : vector<32x32xf32>
    %196 = arith.mulf %195, %123 : vector<32x32xf32>
    %197 = arith.addf %190, %196 : vector<32x32xf32>
    %198 = vector.extract_strided_slice %100 {offsets = [5, 0], sizes = [1, 32], strides = [1, 1]} : vector<8x32xf32> to vector<1x32xf32>
    %cst_61 = arith.constant dense<0.000000e+00> : vector<1x32xf32>
    %199 = tpu.matmul %198, %197, %cst_61 {dimension_numbers = #tpu.dot_dimension_numbers<[1], [0], [0], [1], [0, 0, 1, 1], [], []>} : vector<1x32xf32>, vector<32x32xf32>, vector<1x32xf32> -> vector<1x32xf32>
    %c5 = arith.constant 5 : index
    %c0_62 = arith.constant 0 : index
    %200 = vector.load %arg20[%c5, %c0_62] : memref<8x32xf32, #tpu.memory_space<vmem>>, vector<1x32xf32>
    tpu.vector_store %arg20[%c5, %c0_62], %199 {strides = array<i32>} : memref<8x32xf32, #tpu.memory_space<vmem>>, vector<1x32xf32>,
    %201 = vector.extract_strided_slice %130 {offsets = [0, 5], sizes = [32, 1], strides = [1, 1]} : vector<32x8xf32> to vector<32x1xf32>
    %202 = vector.broadcast %201 : vector<32x1xf32> to vector<32x32xf32>
    %203 = arith.mulf %197, %202 : vector<32x32xf32>
    %204 = vector.extract_strided_slice %129 {offsets = [0, 5], sizes = [32, 1], strides = [1, 1]} : vector<32x8xf32> to vector<32x1xf32>
    %205 = vector.extract_strided_slice %106 {offsets = [5, 0], sizes = [1, 32], strides = [1, 1]} : vector<8x32xf32> to vector<1x32xf32>
    %206 = vector.broadcast %204 : vector<32x1xf32> to vector<32x32xf32>
    %207 = vector.broadcast %205 : vector<1x32xf32> to vector<32x32xf32>
    %208 = arith.mulf %206, %207 : vector<32x32xf32>
    %209 = arith.mulf %208, %123 : vector<32x32xf32>
    %210 = arith.addf %203, %209 : vector<32x32xf32>
    %211 = vector.extract_strided_slice %100 {offsets = [6, 0], sizes = [1, 32], strides = [1, 1]} : vector<8x32xf32> to vector<1x32xf32>
    %cst_63 = arith.constant dense<0.000000e+00> : vector<1x32xf32>
    %212 = tpu.matmul %211, %210, %cst_63 {dimension_numbers = #tpu.dot_dimension_numbers<[1], [0], [0], [1], [0, 0, 1, 1], [], []>} : vector<1x32xf32>, vector<32x32xf32>, vector<1x32xf32> -> vector<1x32xf32>
    %c6 = arith.constant 6 : index
    %c0_64 = arith.constant 0 : index
    %213 = vector.load %arg20[%c6, %c0_64] : memref<8x32xf32, #tpu.memory_space<vmem>>, vector<1x32xf32>
    tpu.vector_store %arg20[%c6, %c0_64], %212 {strides = array<i32>} : memref<8x32xf32, #tpu.memory_space<vmem>>, vector<1x32xf32>,
    %214 = vector.extract_strided_slice %130 {offsets = [0, 6], sizes = [32, 1], strides = [1, 1]} : vector<32x8xf32> to vector<32x1xf32>
    %215 = vector.broadcast %214 : vector<32x1xf32> to vector<32x32xf32>
    %216 = arith.mulf %210, %215 : vector<32x32xf32>
    %217 = vector.extract_strided_slice %129 {offsets = [0, 6], sizes = [32, 1], strides = [1, 1]} : vector<32x8xf32> to vector<32x1xf32>
    %218 = vector.extract_strided_slice %106 {offsets = [6, 0], sizes = [1, 32], strides = [1, 1]} : vector<8x32xf32> to vector<1x32xf32>
    %219 = vector.broadcast %217 : vector<32x1xf32> to vector<32x32xf32>
    %220 = vector.broadcast %218 : vector<1x32xf32> to vector<32x32xf32>
    %221 = arith.mulf %219, %220 : vector<32x32xf32>
    %222 = arith.mulf %221, %123 : vector<32x32xf32>
    %223 = arith.addf %216, %222 : vector<32x32xf32>
    %224 = vector.extract_strided_slice %100 {offsets = [7, 0], sizes = [1, 32], strides = [1, 1]} : vector<8x32xf32> to vector<1x32xf32>
    %cst_65 = arith.constant dense<0.000000e+00> : vector<1x32xf32>
    %225 = tpu.matmul %224, %223, %cst_65 {dimension_numbers = #tpu.dot_dimension_numbers<[1], [0], [0], [1], [0, 0, 1, 1], [], []>} : vector<1x32xf32>, vector<32x32xf32>, vector<1x32xf32> -> vector<1x32xf32>
    %c7 = arith.constant 7 : index
    %c0_66 = arith.constant 0 : index
    %226 = vector.load %arg20[%c7, %c0_66] : memref<8x32xf32, #tpu.memory_space<vmem>>, vector<1x32xf32>
    tpu.vector_store %arg20[%c7, %c0_66], %225 {strides = array<i32>} : memref<8x32xf32, #tpu.memory_space<vmem>>, vector<1x32xf32>,
    %227 = vector.extract_strided_slice %130 {offsets = [0, 7], sizes = [32, 1], strides = [1, 1]} : vector<32x8xf32> to vector<32x1xf32>
    %228 = vector.broadcast %227 : vector<32x1xf32> to vector<32x32xf32>
    %229 = arith.mulf %223, %228 : vector<32x32xf32>
    %230 = vector.extract_strided_slice %129 {offsets = [0, 7], sizes = [32, 1], strides = [1, 1]} : vector<32x8xf32> to vector<32x1xf32>
    %231 = vector.extract_strided_slice %106 {offsets = [7, 0], sizes = [1, 32], strides = [1, 1]} : vector<8x32xf32> to vector<1x32xf32>
    %232 = vector.broadcast %230 : vector<32x1xf32> to vector<32x32xf32>
    %233 = vector.broadcast %231 : vector<1x32xf32> to vector<32x32xf32>
    %234 = arith.mulf %232, %233 : vector<32x32xf32>
    %235 = arith.mulf %234, %123 : vector<32x32xf32>
    %236 = arith.addf %229, %235 : vector<32x32xf32>
    %c0_67 = arith.constant 0 : index
    %c0_68 = arith.constant 0 : index
    %c0_69 = arith.constant 0 : index
    %237 = vector.load %arg19[%c0_67, %c0_68, %c0_69] : memref<1x32x32xf32, #tpu.memory_space<vmem>>, vector<1x32x32xf32>
    %238 = vector.shape_cast %237 : vector<1x32x32xf32> to vector<32x32xf32>
    %239 = vector.shape_cast %236 : vector<32x32xf32> to vector<1x32x32xf32>
    tpu.vector_store %arg19[%c0_67, %c0_68, %c0_69], %239 {strides = array<i32>} : memref<1x32x32xf32, #tpu.memory_space<vmem>>, vector<1x32x32xf32>,
    %c0_70 = arith.constant 0 : index
    %c0_71 = arith.constant 0 : index
    %240 = vector.load %arg20[%c0_70, %c0_71] : memref<8x32xf32, #tpu.memory_space<vmem>>, vector<8x32xf32>
    %241 = arith.addf %240, %128 : vector<8x32xf32>
    %c0_72 = arith.constant 0 : index
    %c0_73 = arith.constant 0 : index
    %242 = vector.load %arg15[%c0_72, %c0_73] : memref<32x4xf32, #tpu.memory_space<vmem>>, vector<32x4xf32>
    %c0_74 = arith.constant 0 : index
    %c0_75 = arith.constant 0 : index
    %243 = vector.load %arg16[%c0_74, %c0_75] : memref<4x32xf32, #tpu.memory_space<vmem>>, vector<4x32xf32>
    %cst_76 = arith.constant dense<0.000000e+00> : vector<8x4xf32>
    %244 = tpu.matmul %241, %242, %cst_76 {dimension_numbers = #tpu.dot_dimension_numbers<[1], [0], [0], [1], [0, 0, 1, 1], [], []>} : vector<8x32xf32>, vector<32x4xf32>, vector<8x4xf32> -> vector<8x4xf32>
    %cst_77 = arith.constant 1.250000e-01 : f32
    %245 = vector.broadcast %cst_77 : f32 to vector<8x4xf32>
    %246 = arith.mulf %244, %245 : vector<8x4xf32>
    %cst_78 = arith.constant dense<0.000000e+00> : vector<8x32xf32>
    %247 = tpu.matmul %246, %243, %cst_78 {dimension_numbers = #tpu.dot_dimension_numbers<[1], [0], [0], [1], [0, 0, 1, 1], [], []>} : vector<8x4xf32>, vector<4x32xf32>, vector<8x32xf32> -> vector<8x32xf32>
    %248 = arith.subf %241, %247 : vector<8x32xf32>
    %249 = arith.mulf %248, %248 : vector<8x32xf32>
    %cst_79 = arith.constant dense<0.000000e+00> : vector<8x4xf32>
    %250 = tpu.matmul %249, %242, %cst_79 {dimension_numbers = #tpu.dot_dimension_numbers<[1], [0], [0], [1], [0, 0, 1, 1], [], []>} : vector<8x32xf32>, vector<32x4xf32>, vector<8x4xf32> -> vector<8x4xf32>
    %cst_80 = arith.constant 1.250000e-01 : f32
    %251 = vector.broadcast %cst_80 : f32 to vector<8x4xf32>
    %252 = arith.mulf %250, %251 : vector<8x4xf32>
    %cst_81 = arith.constant dense<0.000000e+00> : vector<8x32xf32>
    %253 = tpu.matmul %252, %243, %cst_81 {dimension_numbers = #tpu.dot_dimension_numbers<[1], [0], [0], [1], [0, 0, 1, 1], [], []>} : vector<8x4xf32>, vector<4x32xf32>, vector<8x32xf32> -> vector<8x32xf32>
    %cst_82 = arith.constant 6.400000e-04 : f32
    %254 = vector.broadcast %cst_82 : f32 to vector<8x32xf32>
    %255 = arith.addf %253, %254 : vector<8x32xf32>
    %256 = math.rsqrt %255 : vector<8x32xf32>
    %257 = arith.mulf %248, %256 : vector<8x32xf32>
    %258 = vector.broadcast %13 : vector<1x32xf32> to vector<8x32xf32>
    %259 = arith.mulf %257, %258 : vector<8x32xf32>
    %260 = vector.broadcast %14 : vector<1x32xf32> to vector<8x32xf32>
    %261 = arith.addf %259, %260 : vector<8x32xf32>
    %262 = arith.negf %109 : vector<8x32xf32>
    %263 = math.exp %262 : vector<8x32xf32>
    %cst_83 = arith.constant 1.000000e+00 : f32
    %264 = vector.broadcast %cst_83 : f32 to vector<8x32xf32>
    %265 = arith.addf %264, %263 : vector<8x32xf32>
    %266 = arith.divf %264, %265 : vector<8x32xf32>
    %267 = arith.mulf %109, %266 : vector<8x32xf32>
    %268 = arith.mulf %261, %267 : vector<8x32xf32>
    %269 = arith.truncf %268 : vector<8x32xf32> to vector<8x32xbf16>
    %c0_84 = arith.constant 0 : index
    %c0_85 = arith.constant 0 : index
    %270 = vector.load %arg13[%c0_84, %c0_85] : memref<32x32xbf16, #tpu.memory_space<vmem>>, vector<32x32xbf16>
    %cst_86 = arith.constant dense<0.000000e+00> : vector<8x32xf32>
    %271 = tpu.matmul %269, %270, %cst_86 {dimension_numbers = #tpu.dot_dimension_numbers<[1], [0], [0], [1], [0, 0, 1, 1], [], []>} : vector<8x32xbf16>, vector<32x32xbf16>, vector<8x32xf32> -> vector<8x32xf32>
    %272 = arith.addf %1, %271 : vector<8x32xf32>
    %c0_87 = arith.constant 0 : index
    %c0_88 = arith.constant 0 : index
    %c0_89 = arith.constant 0 : index
    %273 = vector.load %arg17[%c0_87, %c0_88, %c0_89] : memref<1x8x32xf32, #tpu.memory_space<vmem>>, vector<1x8x32xf32>
    %274 = vector.shape_cast %273 : vector<1x8x32xf32> to vector<8x32xf32>
    %275 = vector.shape_cast %272 : vector<8x32xf32> to vector<1x8x32xf32>
    tpu.vector_store %arg17[%c0_87, %c0_88, %c0_89], %275 {strides = array<i32>} : memref<1x8x32xf32, #tpu.memory_space<vmem>>, vector<1x8x32xf32>,
    %276 = vector.extract_strided_slice %34 {offsets = [7, 0], sizes = [1, 32], strides = [1, 1]} : vector<8x32xf32> to vector<1x32xf32>
    %c0_90 = arith.constant 0 : index
    %c0_91 = arith.constant 0 : index
    %277 = vector.load %arg18[%c0_90, %c0_91] : memref<1x32xf32, #tpu.memory_space<vmem>>, vector<1x32xf32>
    tpu.vector_store %arg18[%c0_90, %c0_91], %276 {strides = array<i32>} : memref<1x32xf32, #tpu.memory_space<vmem>>, vector<1x32xf32>,
    return
  }
  func.func @transform_0(%arg0: i32) -> (i32, i32, i32) {
    %c0_i32 = arith.constant 0 : i32
    %c0_i32_0 = arith.constant 0 : i32
    %c0_i32_1 = arith.constant 0 : i32
    return %arg0, %c0_i32, %c0_i32_0 : i32, i32, i32
  }
  func.func @transform_1(%arg0: i32) -> (i32, i32) {
    %c0_i32 = arith.constant 0 : i32
    %c0_i32_0 = arith.constant 0 : i32
    return %arg0, %c0_i32 : i32, i32
  }
  func.func @transform_2(%arg0: i32) -> (i32, i32, i32) {
    %c0_i32 = arith.constant 0 : i32
    %c0_i32_0 = arith.constant 0 : i32
    %c0_i32_1 = arith.constant 0 : i32
    return %arg0, %c0_i32, %c0_i32_0 : i32, i32, i32
  }
  func.func @transform_3(%arg0: i32) -> (i32, i32) {
    %c0_i32 = arith.constant 0 : i32
    %c0_i32_0 = arith.constant 0 : i32
    %c0_i32_1 = arith.constant 0 : i32
    return %c0_i32, %c0_i32_0 : i32, i32
  }
  func.func @transform_4(%arg0: i32) -> (i32, i32) {
    %c0_i32 = arith.constant 0 : i32
    %c0_i32_0 = arith.constant 0 : i32
    %c0_i32_1 = arith.constant 0 : i32
    return %c0_i32, %c0_i32_0 : i32, i32
  }
  func.func @transform_5(%arg0: i32) -> (i32, i32) {
    %c0_i32 = arith.constant 0 : i32
    %c0_i32_0 = arith.constant 0 : i32
    %c0_i32_1 = arith.constant 0 : i32
    return %c0_i32, %c0_i32_0 : i32, i32
  }
  func.func @transform_6(%arg0: i32) -> (i32, i32) {
    %c0_i32 = arith.constant 0 : i32
    %c0_i32_0 = arith.constant 0 : i32
    %c0_i32_1 = arith.constant 0 : i32
    return %c0_i32, %c0_i32_0 : i32, i32
  }
  func.func @transform_7(%arg0: i32) -> (i32, i32) {
    %c0_i32 = arith.constant 0 : i32
    %c0_i32_0 = arith.constant 0 : i32
    %c0_i32_1 = arith.constant 0 : i32
    return %c0_i32, %c0_i32_0 : i32, i32
  }
  func.func @transform_8(%arg0: i32) -> (i32, i32) {
    %c0_i32 = arith.constant 0 : i32
    %c0_i32_0 = arith.constant 0 : i32
    %c0_i32_1 = arith.constant 0 : i32
    return %c0_i32, %c0_i32_0 : i32, i32
  }
  func.func @transform_9(%arg0: i32) -> (i32, i32) {
    %c0_i32 = arith.constant 0 : i32
    %c0_i32_0 = arith.constant 0 : i32
    %c0_i32_1 = arith.constant 0 : i32
    return %c0_i32, %c0_i32_0 : i32, i32
  }
  func.func @transform_10(%arg0: i32) -> (i32, i32) {
    %c0_i32 = arith.constant 0 : i32
    %c0_i32_0 = arith.constant 0 : i32
    %c0_i32_1 = arith.constant 0 : i32
    return %c0_i32, %c0_i32_0 : i32, i32
  }
  func.func @transform_11(%arg0: i32) -> (i32, i32) {
    %c0_i32 = arith.constant 0 : i32
    %c0_i32_0 = arith.constant 0 : i32
    %c0_i32_1 = arith.constant 0 : i32
    return %c0_i32, %c0_i32_0 : i32, i32
  }
  func.func @transform_12(%arg0: i32) -> (i32, i32) {
    %c0_i32 = arith.constant 0 : i32
    %c0_i32_0 = arith.constant 0 : i32
    %c0_i32_1 = arith.constant 0 : i32
    return %c0_i32, %c0_i32_0 : i32, i32
  }
  func.func @transform_13(%arg0: i32) -> (i32, i32) {
    %c0_i32 = arith.constant 0 : i32
    %c0_i32_0 = arith.constant 0 : i32
    %c0_i32_1 = arith.constant 0 : i32
    return %c0_i32, %c0_i32_0 : i32, i32
  }
  func.func @transform_14(%arg0: i32) -> (i32, i32) {
    %c0_i32 = arith.constant 0 : i32
    %c0_i32_0 = arith.constant 0 : i32
    %c0_i32_1 = arith.constant 0 : i32
    return %c0_i32, %c0_i32_0 : i32, i32
  }
  func.func @transform_15(%arg0: i32) -> (i32, i32) {
    %c0_i32 = arith.constant 0 : i32
    %c0_i32_0 = arith.constant 0 : i32
    %c0_i32_1 = arith.constant 0 : i32
    return %c0_i32, %c0_i32_0 : i32, i32
  }
  func.func @transform_16(%arg0: i32) -> (i32, i32, i32) {
    %c0_i32 = arith.constant 0 : i32
    %c0_i32_0 = arith.constant 0 : i32
    %c0_i32_1 = arith.constant 0 : i32
    return %arg0, %c0_i32, %c0_i32_0 : i32, i32, i32
  }
  func.func @transform_17(%arg0: i32) -> (i32, i32) {
    %c0_i32 = arith.constant 0 : i32
    %c0_i32_0 = arith.constant 0 : i32
    return %arg0, %c0_i32 : i32, i32
  }
  func.func @transform_18(%arg0: i32) -> (i32, i32, i32) {
    %c0_i32 = arith.constant 0 : i32
    %c0_i32_0 = arith.constant 0 : i32
    %c0_i32_1 = arith.constant 0 : i32
    return %arg0, %c0_i32, %c0_i32_0 : i32, i32, i32
  }
}

module attributes {stable_mosaic.version = 11 : i64} {
  func.func @_channel_mix_kernel(%arg0: i32, %arg1: memref<1x8x32xf32, #tpu.memory_space<vmem>>, %arg2: memref<1x32xf32, #tpu.memory_space<vmem>>, %arg3: memref<4x32xf32, #tpu.memory_space<vmem>>, %arg4: memref<32x96xbf16, #tpu.memory_space<vmem>>, %arg5: memref<96x32xbf16, #tpu.memory_space<vmem>>, %arg6: memref<32x32xbf16, #tpu.memory_space<vmem>>, %arg7: memref<1x8x32xf32, #tpu.memory_space<vmem>>, %arg8: memref<1x32xf32, #tpu.memory_space<vmem>>) attributes {dimension_semantics = [#tpu.dimension_semantics<parallel>], iteration_bounds = array<i64: 1>, scalar_prefetch = 0 : i64, scratch_operands = 0 : i64, tpu.core_type = #tpu.core_type<tc>, window_params = [{transform_indices = @transform_0, window_bounds = array<i64: 1, 8, 32>}, {transform_indices = @transform_1, window_bounds = array<i64: 1, 32>}, {pipeline_mode = #tpu.pipeline_mode<synchronous>, transform_indices = @transform_2, window_bounds = array<i64: 4, 32>}, {pipeline_mode = #tpu.pipeline_mode<synchronous>, transform_indices = @transform_3, window_bounds = array<i64: 32, 96>}, {pipeline_mode = #tpu.pipeline_mode<synchronous>, transform_indices = @transform_4, window_bounds = array<i64: 96, 32>}, {pipeline_mode = #tpu.pipeline_mode<synchronous>, transform_indices = @transform_5, window_bounds = array<i64: 32, 32>}, {transform_indices = @transform_6, window_bounds = array<i64: 1, 8, 32>}, {transform_indices = @transform_7, window_bounds = array<i64: 1, 32>}]} {
    %c0 = arith.constant 0 : index
    %c0_0 = arith.constant 0 : index
    %c0_1 = arith.constant 0 : index
    %0 = vector.load %arg1[%c0, %c0_0, %c0_1] : memref<1x8x32xf32, #tpu.memory_space<vmem>>, vector<1x8x32xf32>
    %1 = vector.shape_cast %0 : vector<1x8x32xf32> to vector<8x32xf32>
    %c0_2 = arith.constant 0 : index
    %c0_3 = arith.constant 0 : index
    %2 = vector.load %arg3[%c0_2, %c0_3] : memref<4x32xf32, #tpu.memory_space<vmem>>, vector<4x32xf32>
    %3 = vector.extract_strided_slice %2 {offsets = [0, 0], sizes = [1, 32], strides = [1, 1]} : vector<4x32xf32> to vector<1x32xf32>
    %4 = vector.extract_strided_slice %2 {offsets = [1, 0], sizes = [1, 32], strides = [1, 1]} : vector<4x32xf32> to vector<1x32xf32>
    %5 = vector.extract_strided_slice %2 {offsets = [2, 0], sizes = [1, 32], strides = [1, 1]} : vector<4x32xf32> to vector<1x32xf32>
    %6 = vector.extract_strided_slice %2 {offsets = [3, 0], sizes = [1, 32], strides = [1, 1]} : vector<4x32xf32> to vector<1x32xf32>
    %cst = arith.constant dense<0.000000e+00> : vector<8xf32>
    %7 = vector.multi_reduction <add>, %1, %cst [1] : vector<8x32xf32> to vector<8xf32>
    %8 = vector.shape_cast %7 : vector<8xf32> to vector<8x1xf32>
    %cst_4 = arith.constant 3.200000e+01 : f32
    %9 = vector.broadcast %cst_4 : f32 to vector<8x1xf32>
    %10 = arith.divf %8, %9 : vector<8x1xf32>
    %11 = vector.broadcast %10 : vector<8x1xf32> to vector<8x32xf32>
    %12 = arith.subf %1, %11 : vector<8x32xf32>
    %13 = arith.mulf %12, %12 : vector<8x32xf32>
    %cst_5 = arith.constant dense<0.000000e+00> : vector<8xf32>
    %14 = vector.multi_reduction <add>, %13, %cst_5 [1] : vector<8x32xf32> to vector<8xf32>
    %15 = vector.shape_cast %14 : vector<8xf32> to vector<8x1xf32>
    %cst_6 = arith.constant 3.200000e+01 : f32
    %16 = vector.broadcast %cst_6 : f32 to vector<8x1xf32>
    %17 = arith.divf %15, %16 : vector<8x1xf32>
    %cst_7 = arith.constant 9.99999974E-6 : f32
    %18 = vector.broadcast %cst_7 : f32 to vector<8x1xf32>
    %19 = arith.addf %17, %18 : vector<8x1xf32>
    %20 = math.rsqrt %19 : vector<8x1xf32>
    %21 = vector.broadcast %20 : vector<8x1xf32> to vector<8x32xf32>
    %22 = arith.mulf %12, %21 : vector<8x32xf32>
    %23 = vector.broadcast %3 : vector<1x32xf32> to vector<8x32xf32>
    %24 = arith.mulf %22, %23 : vector<8x32xf32>
    %25 = vector.broadcast %4 : vector<1x32xf32> to vector<8x32xf32>
    %26 = arith.addf %24, %25 : vector<8x32xf32>
    %c0_8 = arith.constant 0 : index
    %c0_9 = arith.constant 0 : index
    %27 = vector.load %arg2[%c0_8, %c0_9] : memref<1x32xf32, #tpu.memory_space<vmem>>, vector<1x32xf32>
    %28 = tpu.iota {dimensions = array<i32: 0>} : vector<8x8xi32>
    %29 = tpu.iota {dimensions = array<i32: 1>} : vector<8x8xi32>
    %c1_i32 = arith.constant 1 : i32
    %30 = vector.broadcast %c1_i32 : i32 to vector<8x8xi32>
    %31 = arith.addi %29, %30 : vector<8x8xi32>
    %32 = arith.cmpi eq, %28, %31 : vector<8x8xi32>
    %33 = arith.extui %32 : vector<8x8xi1> to vector<8x8xi32>
    %34 = arith.sitofp %33 : vector<8x8xi32> to vector<8x8xf32>
    %cst_10 = arith.constant dense<0.000000e+00> : vector<8x32xf32>
    %35 = tpu.matmul %34, %26, %cst_10 {dimension_numbers = #tpu.dot_dimension_numbers<[1], [0], [0], [1], [0, 0, 1, 1], [], []>} : vector<8x8xf32>, vector<8x32xf32>, vector<8x32xf32> -> vector<8x32xf32>
    %36 = tpu.iota {dimensions = array<i32: 0>} : vector<8x32xi32>
    %c0_i32 = arith.constant 0 : i32
    %37 = vector.broadcast %c0_i32 : i32 to vector<8x32xi32>
    %38 = arith.cmpi eq, %36, %37 : vector<8x32xi32>
    %39 = vector.shape_cast %27 : vector<1x32xf32> to vector<1x32xf32>
    %40 = vector.broadcast %39 : vector<1x32xf32> to vector<8x32xf32>
    %41 = arith.select %38, %40, %35 : vector<8x32xi1>, vector<8x32xf32>
    %42 = arith.subf %41, %26 : vector<8x32xf32>
    %43 = vector.broadcast %5 : vector<1x32xf32> to vector<8x32xf32>
    %44 = arith.mulf %42, %43 : vector<8x32xf32>
    %45 = arith.addf %26, %44 : vector<8x32xf32>
    %46 = vector.broadcast %6 : vector<1x32xf32> to vector<8x32xf32>
    %47 = arith.mulf %42, %46 : vector<8x32xf32>
    %48 = arith.addf %26, %47 : vector<8x32xf32>
    %49 = arith.truncf %45 : vector<8x32xf32> to vector<8x32xbf16>
    %c0_11 = arith.constant 0 : index
    %c0_12 = arith.constant 0 : index
    %50 = vector.load %arg4[%c0_11, %c0_12] : memref<32x96xbf16, #tpu.memory_space<vmem>>, vector<32x96xbf16>
    %cst_13 = arith.constant dense<0.000000e+00> : vector<8x96xf32>
    %51 = tpu.matmul %49, %50, %cst_13 {dimension_numbers = #tpu.dot_dimension_numbers<[1], [0], [0], [1], [0, 0, 1, 1], [], []>} : vector<8x32xbf16>, vector<32x96xbf16>, vector<8x96xf32> -> vector<8x96xf32>
    %cst_14 = arith.constant 0.000000e+00 : f32
    %52 = vector.broadcast %cst_14 : f32 to vector<8x96xf32>
    %53 = arith.maximumf %51, %52 : vector<8x96xf32>
    %54 = arith.mulf %53, %53 : vector<8x96xf32>
    %55 = arith.truncf %54 : vector<8x96xf32> to vector<8x96xbf16>
    %c0_15 = arith.constant 0 : index
    %c0_16 = arith.constant 0 : index
    %56 = vector.load %arg5[%c0_15, %c0_16] : memref<96x32xbf16, #tpu.memory_space<vmem>>, vector<96x32xbf16>
    %cst_17 = arith.constant dense<0.000000e+00> : vector<8x32xf32>
    %57 = tpu.matmul %55, %56, %cst_17 {dimension_numbers = #tpu.dot_dimension_numbers<[1], [0], [0], [1], [0, 0, 1, 1], [], []>} : vector<8x96xbf16>, vector<96x32xbf16>, vector<8x32xf32> -> vector<8x32xf32>
    %58 = arith.truncf %48 : vector<8x32xf32> to vector<8x32xbf16>
    %c0_18 = arith.constant 0 : index
    %c0_19 = arith.constant 0 : index
    %59 = vector.load %arg6[%c0_18, %c0_19] : memref<32x32xbf16, #tpu.memory_space<vmem>>, vector<32x32xbf16>
    %cst_20 = arith.constant dense<0.000000e+00> : vector<8x32xf32>
    %60 = tpu.matmul %58, %59, %cst_20 {dimension_numbers = #tpu.dot_dimension_numbers<[1], [0], [0], [1], [0, 0, 1, 1], [], []>} : vector<8x32xbf16>, vector<32x32xbf16>, vector<8x32xf32> -> vector<8x32xf32>
    %61 = arith.negf %60 : vector<8x32xf32>
    %62 = math.exp %61 : vector<8x32xf32>
    %cst_21 = arith.constant 1.000000e+00 : f32
    %63 = vector.broadcast %cst_21 : f32 to vector<8x32xf32>
    %64 = arith.addf %63, %62 : vector<8x32xf32>
    %65 = arith.divf %63, %64 : vector<8x32xf32>
    %66 = arith.mulf %65, %57 : vector<8x32xf32>
    %67 = arith.addf %1, %66 : vector<8x32xf32>
    %c0_22 = arith.constant 0 : index
    %c0_23 = arith.constant 0 : index
    %c0_24 = arith.constant 0 : index
    %68 = vector.load %arg7[%c0_22, %c0_23, %c0_24] : memref<1x8x32xf32, #tpu.memory_space<vmem>>, vector<1x8x32xf32>
    %69 = vector.shape_cast %68 : vector<1x8x32xf32> to vector<8x32xf32>
    %70 = vector.shape_cast %67 : vector<8x32xf32> to vector<1x8x32xf32>
    tpu.vector_store %arg7[%c0_22, %c0_23, %c0_24], %70 {strides = array<i32>} : memref<1x8x32xf32, #tpu.memory_space<vmem>>, vector<1x8x32xf32>,
    %71 = vector.extract_strided_slice %26 {offsets = [7, 0], sizes = [1, 32], strides = [1, 1]} : vector<8x32xf32> to vector<1x32xf32>
    %c0_25 = arith.constant 0 : index
    %c0_26 = arith.constant 0 : index
    %72 = vector.load %arg8[%c0_25, %c0_26] : memref<1x32xf32, #tpu.memory_space<vmem>>, vector<1x32xf32>
    tpu.vector_store %arg8[%c0_25, %c0_26], %71 {strides = array<i32>} : memref<1x32xf32, #tpu.memory_space<vmem>>, vector<1x32xf32>,
    return
  }
  func.func @transform_0(%arg0: i32) -> (i32, i32, i32) {
    %c0_i32 = arith.constant 0 : i32
    %c0_i32_0 = arith.constant 0 : i32
    %c0_i32_1 = arith.constant 0 : i32
    return %arg0, %c0_i32, %c0_i32_0 : i32, i32, i32
  }
  func.func @transform_1(%arg0: i32) -> (i32, i32) {
    %c0_i32 = arith.constant 0 : i32
    %c0_i32_0 = arith.constant 0 : i32
    return %arg0, %c0_i32 : i32, i32
  }
  func.func @transform_2(%arg0: i32) -> (i32, i32) {
    %c0_i32 = arith.constant 0 : i32
    %c0_i32_0 = arith.constant 0 : i32
    %c0_i32_1 = arith.constant 0 : i32
    return %c0_i32, %c0_i32_0 : i32, i32
  }
  func.func @transform_3(%arg0: i32) -> (i32, i32) {
    %c0_i32 = arith.constant 0 : i32
    %c0_i32_0 = arith.constant 0 : i32
    %c0_i32_1 = arith.constant 0 : i32
    return %c0_i32, %c0_i32_0 : i32, i32
  }
  func.func @transform_4(%arg0: i32) -> (i32, i32) {
    %c0_i32 = arith.constant 0 : i32
    %c0_i32_0 = arith.constant 0 : i32
    %c0_i32_1 = arith.constant 0 : i32
    return %c0_i32, %c0_i32_0 : i32, i32
  }
  func.func @transform_5(%arg0: i32) -> (i32, i32) {
    %c0_i32 = arith.constant 0 : i32
    %c0_i32_0 = arith.constant 0 : i32
    %c0_i32_1 = arith.constant 0 : i32
    return %c0_i32, %c0_i32_0 : i32, i32
  }
  func.func @transform_6(%arg0: i32) -> (i32, i32, i32) {
    %c0_i32 = arith.constant 0 : i32
    %c0_i32_0 = arith.constant 0 : i32
    %c0_i32_1 = arith.constant 0 : i32
    return %arg0, %c0_i32, %c0_i32_0 : i32, i32, i32
  }
  func.func @transform_7(%arg0: i32) -> (i32, i32) {
    %c0_i32 = arith.constant 0 : i32
    %c0_i32_0 = arith.constant 0 : i32
    return %arg0, %c0_i32 : i32, i32
  }
}

module attributes {stable_mosaic.version = 11 : i64} {
  func.func @_head_kernel(%arg0: i32, %arg1: memref<1x8x32xf32, #tpu.memory_space<vmem>>, %arg2: memref<2x32xf32, #tpu.memory_space<vmem>>, %arg3: memref<32x64xbf16, #tpu.memory_space<vmem>>, %arg4: memref<1x8x64xf32, #tpu.memory_space<vmem>>) attributes {dimension_semantics = [#tpu.dimension_semantics<parallel>], iteration_bounds = array<i64: 1>, scalar_prefetch = 0 : i64, scratch_operands = 0 : i64, tpu.core_type = #tpu.core_type<tc>, window_params = [{transform_indices = @transform_0, window_bounds = array<i64: 1, 8, 32>}, {pipeline_mode = #tpu.pipeline_mode<synchronous>, transform_indices = @transform_1, window_bounds = array<i64: 2, 32>}, {pipeline_mode = #tpu.pipeline_mode<synchronous>, transform_indices = @transform_2, window_bounds = array<i64: 32, 64>}, {transform_indices = @transform_3, window_bounds = array<i64: 1, 8, 64>}]} {
    %c0 = arith.constant 0 : index
    %c0_0 = arith.constant 0 : index
    %c0_1 = arith.constant 0 : index
    %0 = vector.load %arg1[%c0, %c0_0, %c0_1] : memref<1x8x32xf32, #tpu.memory_space<vmem>>, vector<1x8x32xf32>
    %1 = vector.shape_cast %0 : vector<1x8x32xf32> to vector<8x32xf32>
    %c0_2 = arith.constant 0 : index
    %c0_3 = arith.constant 0 : index
    %2 = vector.load %arg2[%c0_2, %c0_3] : memref<2x32xf32, #tpu.memory_space<vmem>>, vector<2x32xf32>
    %3 = vector.extract_strided_slice %2 {offsets = [0, 0], sizes = [1, 32], strides = [1, 1]} : vector<2x32xf32> to vector<1x32xf32>
    %4 = vector.extract_strided_slice %2 {offsets = [1, 0], sizes = [1, 32], strides = [1, 1]} : vector<2x32xf32> to vector<1x32xf32>
    %cst = arith.constant dense<0.000000e+00> : vector<8xf32>
    %5 = vector.multi_reduction <add>, %1, %cst [1] : vector<8x32xf32> to vector<8xf32>
    %6 = vector.shape_cast %5 : vector<8xf32> to vector<8x1xf32>
    %cst_4 = arith.constant 3.200000e+01 : f32
    %7 = vector.broadcast %cst_4 : f32 to vector<8x1xf32>
    %8 = arith.divf %6, %7 : vector<8x1xf32>
    %9 = vector.broadcast %8 : vector<8x1xf32> to vector<8x32xf32>
    %10 = arith.subf %1, %9 : vector<8x32xf32>
    %11 = arith.mulf %10, %10 : vector<8x32xf32>
    %cst_5 = arith.constant dense<0.000000e+00> : vector<8xf32>
    %12 = vector.multi_reduction <add>, %11, %cst_5 [1] : vector<8x32xf32> to vector<8xf32>
    %13 = vector.shape_cast %12 : vector<8xf32> to vector<8x1xf32>
    %cst_6 = arith.constant 3.200000e+01 : f32
    %14 = vector.broadcast %cst_6 : f32 to vector<8x1xf32>
    %15 = arith.divf %13, %14 : vector<8x1xf32>
    %cst_7 = arith.constant 9.99999974E-6 : f32
    %16 = vector.broadcast %cst_7 : f32 to vector<8x1xf32>
    %17 = arith.addf %15, %16 : vector<8x1xf32>
    %18 = math.rsqrt %17 : vector<8x1xf32>
    %19 = vector.broadcast %18 : vector<8x1xf32> to vector<8x32xf32>
    %20 = arith.mulf %10, %19 : vector<8x32xf32>
    %21 = vector.broadcast %3 : vector<1x32xf32> to vector<8x32xf32>
    %22 = arith.mulf %20, %21 : vector<8x32xf32>
    %23 = vector.broadcast %4 : vector<1x32xf32> to vector<8x32xf32>
    %24 = arith.addf %22, %23 : vector<8x32xf32>
    %25 = arith.truncf %24 : vector<8x32xf32> to vector<8x32xbf16>
    %c0_8 = arith.constant 0 : index
    %c0_9 = arith.constant 0 : index
    %26 = vector.load %arg3[%c0_8, %c0_9] : memref<32x64xbf16, #tpu.memory_space<vmem>>, vector<32x64xbf16>
    %cst_10 = arith.constant dense<0.000000e+00> : vector<8x64xf32>
    %27 = tpu.matmul %25, %26, %cst_10 {dimension_numbers = #tpu.dot_dimension_numbers<[1], [0], [0], [1], [0, 0, 1, 1], [], []>} : vector<8x32xbf16>, vector<32x64xbf16>, vector<8x64xf32> -> vector<8x64xf32>
    %c0_11 = arith.constant 0 : index
    %c0_12 = arith.constant 0 : index
    %c0_13 = arith.constant 0 : index
    %28 = vector.load %arg4[%c0_11, %c0_12, %c0_13] : memref<1x8x64xf32, #tpu.memory_space<vmem>>, vector<1x8x64xf32>
    %29 = vector.shape_cast %28 : vector<1x8x64xf32> to vector<8x64xf32>
    %30 = vector.shape_cast %27 : vector<8x64xf32> to vector<1x8x64xf32>
    tpu.vector_store %arg4[%c0_11, %c0_12, %c0_13], %30 {strides = array<i32>} : memref<1x8x64xf32, #tpu.memory_space<vmem>>, vector<1x8x64xf32>,
    return
  }
  func.func @transform_0(%arg0: i32) -> (i32, i32, i32) {
    %c0_i32 = arith.constant 0 : i32
    %c0_i32_0 = arith.constant 0 : i32
    %c0_i32_1 = arith.constant 0 : i32
    return %arg0, %c0_i32, %c0_i32_0 : i32, i32, i32
  }
  func.func @transform_1(%arg0: i32) -> (i32, i32) {
    %c0_i32 = arith.constant 0 : i32
    %c0_i32_0 = arith.constant 0 : i32
    %c0_i32_1 = arith.constant 0 : i32
    return %c0_i32, %c0_i32_0 : i32, i32
  }
  func.func @transform_2(%arg0: i32) -> (i32, i32) {
    %c0_i32 = arith.constant 0 : i32
    %c0_i32_0 = arith.constant 0 : i32
    %c0_i32_1 = arith.constant 0 : i32
    return %c0_i32, %c0_i32_0 : i32, i32
  }
  func.func @transform_3(%arg0: i32) -> (i32, i32, i32) {
    %c0_i32 = arith.constant 0 : i32
    %c0_i32_0 = arith.constant 0 : i32
    %c0_i32_1 = arith.constant 0 : i32
    return %arg0, %c0_i32, %c0_i32_0 : i32, i32, i32
  }
}

</mosaic_0001>

<bundles_post_ra>
// kernel: rwkv_forward.9
= control target key start
LH: loop header
LB: loop body
LE: loop exit
PB: predicated region body
PF: predicated region fallthrough
CT: control target
= control target key end

     0   :  { %vm18_vm0 = vcmask 261120   ;;  %s214_s0 = inlined_call_operand.vmem [shape: f32[1,8,32], index: 0, kind: input, shape index: {}]   ;;  %s215_s1 = inlined_call_operand.vmem [shape: f32[2,32], index: 1, kind: input, shape index: {}]   ;;  %s216_s2 = inlined_call_operand.vmem [shape: bf16[32,64], index: 2, kind: input, shape index: {}]   ;;  %s217_s3 = inlined_call_operand.hbm [shape: f32[1,8,64], index: 3, kind: output, shape index: {}]  }
   0x1   :  { %v16_v0 = vld [vmem:[%s214_s0] sm:$0xff] }
   0x2   :  { %v19_v1 = vsel %vm18_vm0, %v16_v0, 0.0 }
   0x3   :  { %20 = vadd.xlane.f32.xlu0 %v19_v1 }
   0x4   :  { %8 = vsyncpa [#allocation3], 0  ;;  %v136_v7 = vld [vmem:[%s216_s2] sm:$0xff]   ;;  %v164_v8 = vmov 0.0   ;;  %v137_v9 = vld [vmem:[%s216_s2 + $0x8] sm:$0xff]   ;;  %vm165_vm1 = vmmov 0   ;;  %v33_v12 = vlaneseq }
   0x5   :  { %125 = vmatprep.subr.bf16.mxu0 %v164_v8  ;;  %129 = vmatprep.mubr.msk.bf16.mxu0 %vm165_vm1, %v164_v8  ;;  %v17_v16 = vld [vmem:[%s215_s1] sm:$0x3]  ;;  %s166_s2 = smov [#allocation2]   ;;  %vm103_vm2 = vcmask 523264  }
   0x6   :  { %126 = vmatpush3.bf16.msra.mxu0 %v136_v7  ;;  %v34_v14 = vshrl.u32 %v33_v12, 7  ;;  %s111_s19 = sshll.u32 %s166_s2, 4  ;;  %s112_s19 = int_to_ptr.vmem [resolvable:$true] %s111_s19 }
   0x7   :  { %127 = vmatprep.subr.bf16.mxu0 %v164_v8  ;;  %s140_s20 = scalar_lea.vmem %s112_s19, 128  ;;  %p145_p1 = scmp.lt.s32.totalorder %s112_s19, %s112_s19 }
   0x8   :  { %v35_v15 = vsub.s32 0, %v34_v14  ;;  %v40_v17 = vsub.s32 1, %v34_v14  ;;  %p141_p0 = scmp.ne.s32.totalorder %s112_s19, %s140_s20  ;;  %p146_p2 = scmp.lt.s32.totalorder %s140_s20, %s140_s20 }
   0xa   :  { %128 = vmatpush3.bf16.msra.mxu0 %v137_v9  ;;  %v36_v18 = vrot.slane %v17_v16, %v35_v15  ;;  %v41_v21 = vrot.slane %v17_v16, %v40_v17  ;;  %p147_p3 = por %p146_p2, %p145_p1 }
   0xc   :  { %p148_p4 = pnand %p147_p3, %p141_p0 }
  0x90   :  { %v21_v2 = vpop.xlane.xlu0 %20 }
  0x91   :  { %v23_v3 = vmul.f32 0.03125, %v21_v2 }
  0x93   :  { %v24_v4 = vsub.f32 %v16_v0, %v23_v3 }
  0x95   :  { %v25_v5 = vmul.f32 %v24_v4, %v24_v4 }
  0x97   :  { %v26_v6 = vsel %vm18_vm0, %v25_v5, 0.0 }
  0x98   :  { %27 = vadd.xlane.f32.xlu0 %v26_v6 }
 0x125   :  { %v28_v10 = vpop.xlane.xlu0 %27 }
 0x126   :  { %v29_v11 = vmul.f32 0.03125, %v28_v10 }
 0x128   :  { %v30_v13 = vadd.f32 1e-05, %v29_v11 }
 0x12a   :  { %138 = vrsqrt.f32 %v30_v13 }
 0x134   :  { %v139_v19 = vpop.eup %138 }
 0x135   :  { %v32_v20 = vmul.f32 %v139_v19, %v24_v4 }
 0x137   :  { %v37_v22 = vmul.f32 %v36_v18, %v32_v20 }
 0x139   :  { %v42_v23 = vadd.f32 %v41_v21, %v37_v22 }
 0x13b   :  { %v43_v24 = vpack.c.bf16 %v42_v23, %v42_v23 }
 0x13d   :  { %130 = vmatmul.mubr.msk.bf16.vlgmr.msra.gmra.mrb[0].mxu0 %vm18_vm0, %v43_v24 }
 0x210   :  { %v97_v25 = vpop.f32.mrb[0].mxu0 }
 0x211   :  { %104 = vst.msk [vmem:[#allocation2] sm:$0xff] %vm103_vm2, %v97_v25  ;;  %v131_v26 = vpop.f32.mrb[1].mxu0 }
 0x212   :  { %v100_v27 = vpop.f32.mrb[2].mxu0 }
 0x213   :  { %151 = shalt.err (!%p148_p4)
}
 0x214   :  { %s152_s22 = scalar_lea.hbm %s217_s3, 128 }
 0x215   :  { %p153_p5 = scmp.ne.s32.totalorder %s217_s3, %s152_s22  ;;  %p156_p6 = scmp.lt.u32.totalorder %s152_s22, %s217_s3 }
 0x217   :  { %p158_p7 = pnand %p156_p6, %p153_p5 }
 0x219   :  { %161 = shalt.err (!%p158_p7)
}
 0x21a   :  { %114 = dma.vmem_to_hbm [thread:$0]  %s112_s19, 128, %s217_s3, [#allocation3]   ;;  %v132_v28 = vpop.f32.mrb[3].mxu0 }
 0x21b   :  { %162 = dma.done.wait [#allocation3], 128  }
 0x21c   :  { %163 = vsyncadd [#allocation3], 4294967168 }
 0x21d   :  { %118 = vsyncpa [#allocation3], 1 }

// kernel: rwkv_forward.6
= control target key start
LH: loop header
LB: loop body
LE: loop exit
PB: predicated region body
PF: predicated region fallthrough
CT: control target
= control target key end

     0   :  { %vm28_vm0 = vcmask 261120   ;;  %v478_v7 = vmov 0.0   ;;  %vm479_vm1 = vmmov 0   ;;  %v43_v10 = vlaneseq  ;;  %s595_s0 = inlined_call_operand.vmem [shape: f32[1,8,32], index: 0, kind: input, shape index: {}]   ;;  %s596_s2 = inlined_call_operand.vmem [shape: f32[4,32], index: 2, kind: input, shape index: {}]   ;;  %s597_s7 = inlined_call_operand.vmem [shape: f32[1,32], index: 7, kind: output, shape index: {1}]   ;;  %s598_s3 = inlined_call_operand.vmem [shape: bf16[32,96], index: 3, kind: input, shape index: {}]   ;;  %s599_s5 = inlined_call_operand.vmem [shape: bf16[32,32], index: 5, kind: input, shape index: {}]   ;;  %s600_s4 = inlined_call_operand.vmem [shape: bf16[96,32], index: 4, kind: input, shape index: {}]   ;;  %s601_s1 = inlined_call_operand.vmem [shape: f32[1,32], index: 1, kind: input, shape index: {}]   ;;  %s602_s6 = inlined_call_operand.vmem [shape: f32[1,8,32], index: 6, kind: output, shape index: {0}]  }
   0x1   :  { %v523_v0 = vld [vmem:[%s595_s0] sm:$0xff]  ;;  %423 = vmatprep.subr.mxu1 %v478_v7  ;;  %436 = vmatprep.subr.bf16.mxu0 %v478_v7  ;;  %vm381_vm3 = vcmask 261127   ;;  %vm62_vm4 = vcmask 64512   ;;  %v463_v26 = vld [vmem:[%s598_s3 + $0x8] sm:$0xff]   ;;  %v468_v29 = vld [vmem:[%s600_s4 + $0x10] sm:$0xff]   ;;  %vm268_vm6 = vcmask 785408  }
   0x2   :  { %v29_v1 = vsel %vm28_vm0, %v523_v0, 0.0  ;;  %425 = vmatprep.mubr.msk.f32.mxu1 %vm479_vm1, %v478_v7  ;;  %448 = vmatprep.mubr.msk.bf16.mxu0 %vm479_vm1, %v478_v7  ;;  %v44_v12 = vshrl.u32 %v43_v10, 7  ;;  %v57_v13 = vand.u32 127, %v43_v10  ;;  %v27_v15 = vld [vmem:[%s596_s2] sm:$0xf]  ;;  %v467_v28 = vld [vmem:[%s600_s4 + $0x8] sm:$0xff]  }
   0x3   :  { %30 = vadd.xlane.f32.xlu0 %v29_v1  ;;  %v462_v25 = vld [vmem:[%s598_s3] sm:$0xff]   ;;  %v469_v30 = vld [vmem:[%s600_s4 + $0x18] sm:$0xff]   ;;  %v465_v45 = vld [vmem:[%s599_s5 + $0x8] sm:$0xff]  }
   0x4   :  { %v45_v14 = vsub.s32 0, %v44_v12  ;;  %v50_v16 = vsub.s32 1, %v44_v12  ;;  %v58_v17 = vadd.s32 1, %v57_v13  ;;  %v466_v27 = vld [vmem:[%s600_s4] sm:$0xff]   ;;  %v147_v31 = vsub.s32 2, %v44_v12  ;;  %v471_v49 = vld [vmem:[%s600_s4 + $0x28] sm:$0xff]  }
   0x5   :  { %437 = vmatpush3.bf16.msra.mxu0 %v466_v27  ;;  %v393_v32 = vld [vmem:[%s601_s1] ss:$0 sm:$0xff]  ;;  %vm136_vm5 = vcmp.eq.s32.totalorder %v44_v12, 0  ;;  %v153_v35 = vsub.s32 3, %v44_v12 }
   0x6   :  { %v46_v18 = vrot.slane %v27_v15, %v45_v14  ;;  %v51_v21 = vrot.slane %v27_v15, %v50_v16  ;;  %vm59_vm2 = vcmp.eq.s32.totalorder %v44_v12, %v58_v17  ;;  %438 = vmatprep.subr.bf16.mxu0 %v478_v7  ;;  %v148_v34 = vrot.slane %v27_v15, %v147_v31  ;;  %v464_v42 = vld [vmem:[%s599_s5] sm:$0xff]  }
   0x7   :  { %v391_v24 = vsel %vm59_vm2, 1.0, %v478_v7  ;;  %v154_v40 = vrot.slane %v27_v15, %v153_v35  ;;  %v470_v48 = vld [vmem:[%s600_s4 + $0x20] sm:$0xff]  }
   0x9   :  { %439 = vmatpush3.bf16.msra.mxu0 %v467_v28 }
   0xa   :  { %440 = vmatprep.subr.bf16.mxu0 %v478_v7 }
   0xd   :  { %441 = vmatpush3.bf16.msra.mxu0 %v468_v29 }
   0xe   :  { %442 = vmatprep.subr.bf16.mxu0 %v478_v7 }
  0x11   :  { %443 = vmatpush3.bf16.msra.mxu0 %v469_v30 }
  0x12   :  { %444 = vmatprep.subr.bf16.mxu0 %v478_v7 }
  0x15   :  { %445 = vmatpush3.bf16.msra.mxu0 %v470_v48 }
  0x16   :  { %446 = vmatprep.subr.bf16.mxu0 %v478_v7 }
  0x19   :  { %447 = vmatpush3.bf16.msra.mxu0 %v471_v49 }
  0x90   :  { %v31_v2 = vpop.xlane.xlu0 %30 }
  0x91   :  { %v33_v3 = vmul.f32 0.03125, %v31_v2 }
  0x93   :  { %v34_v4 = vsub.f32 %v523_v0, %v33_v3 }
  0x95   :  { %v35_v5 = vmul.f32 %v34_v4, %v34_v4 }
  0x97   :  { %v36_v6 = vsel %vm28_vm0, %v35_v5, 0.0 }
  0x98   :  { %37 = vadd.xlane.f32.xlu0 %v36_v6 }
 0x125   :  { %v38_v8 = vpop.xlane.xlu0 %37 }
 0x126   :  { %v39_v9 = vmul.f32 0.03125, %v38_v8 }
 0x128   :  { %v40_v11 = vadd.f32 1e-05, %v39_v9 }
 0x12a   :  { %472 = vrsqrt.f32 %v40_v11 }
 0x134   :  { %v473_v19 = vpop.eup %472 }
 0x135   :  { %v42_v20 = vmul.f32 %v473_v19, %v34_v4 }
 0x137   :  { %v47_v22 = vmul.f32 %v46_v18, %v42_v20 }
 0x139   :  { %v52_v23 = vadd.f32 %v51_v21, %v47_v22 }
 0x13b   :  { %424 = vmatpush3.msra.mxu1 %v52_v23  ;;  %382 = vst.msk [vmem:[%s597_s7 - $0x7] sm:$0x80] %vm381_vm3, %v52_v23 }
 0x13c   :  { %426 = vmatmul.mubr.msk.f32.vlgmr.msra.gmra.mrb[0].mxu1 %vm62_vm4, %v391_v24  ;;  %428 = vmatprep.subr.bf16.mxu1 %v478_v7 }
 0x13d   :  { %432 = vmatprep.mubr.msk.bf16.mxu1 %vm479_vm1, %v478_v7  ;;  %429 = vmatpush3.bf16.msra.mxu1 %v462_v25 }
 0x13e   :  { %430 = vmatprep.subr.bf16.mxu1 %v478_v7 }
 0x141   :  { %431 = vmatpush3.bf16.msra.mxu1 %v463_v26 }
 0x142   :  { %452 = vmatprep.subr.bf16.mxu1 %v478_v7 }
 0x20f   :  { %v132_v33 = vpop.f32.mrb[0].mxu1 }
 0x210   :  { %v143_v36 = vsel %vm136_vm5, %v393_v32, %v132_v33  ;;  %v427_v37 = vpop.f32.mrb[1].mxu1 }
 0x211   :  { %v144_v38 = vsub.f32 %v143_v36, %v52_v23 }
 0x213   :  { %v149_v39 = vmul.f32 %v148_v34, %v144_v38  ;;  %v155_v43 = vmul.f32 %v154_v40, %v144_v38 }
 0x215   :  { %v150_v41 = vadd.f32 %v149_v39, %v52_v23  ;;  %v156_v46 = vadd.f32 %v155_v43, %v52_v23 }
 0x217   :  { %v157_v44 = vpack.c.bf16 %v150_v41, %v150_v41  ;;  %v312_v47 = vpack.c.bf16 %v156_v46, %v156_v46 }
 0x219   :  { %433 = vmatmul.mubr.msk.bf16.vlgmr.msra.gmra.mrb[4].mxu1 %vm28_vm0, %v157_v44 }
 0x21a   :  { %453 = vmatpush3.bf16.msra.mxu1 %v464_v42  ;;  %456 = vmatprep.mubr.msk.bf16.mxu1 %vm479_vm1, %v478_v7 }
 0x21b   :  { %454 = vmatprep.subr.bf16.mxu1 %v478_v7 }
 0x21e   :  { %455 = vmatpush3.bf16.msra.mxu1 %v465_v45 }
 0x221   :  { %457 = vmatmul.mubr.msk.bf16.vlgmr.msra.gmra.mrb[8].mxu1 %vm28_vm0, %v312_v47 }
 0x2ec   :  { %v211_v50 = vpop.f32.mrb[4].mxu1 }
 0x2ed   :  { %v217_v51 = vmax.f32 %v211_v50, 0.0  ;;  %v434_v52 = vpop.f32.mrb[5].mxu1 }
 0x2ee   :  { %v214_v53 = vpop.f32.mrb[6].mxu1 }
 0x2ef   :  { %v218_v54 = vmul.f32 %v217_v51, %v217_v51  ;;  %v435_v55 = vpop.f32.mrb[7].mxu1 }
 0x2f1   :  { %v219_v56 = vpack.c.bf16 %v218_v54, %v218_v54 }
 0x2f3   :  { %449 = vmatmul.mubr.msk.bf16.vlgmr.msra.gmra.mrb[0].mxu0 %vm268_vm6, %v219_v56 }
 0x2f4   :  { %v366_v57 = vpop.f32.mrb[8].mxu1 }
 0x2f5   :  { %v458_v58 = vpop.f32.mrb[9].mxu1  ;;  %v407_v61 = vmul.f32 -1.442695, %v366_v57 }
 0x2f6   :  { %v369_v59 = vpop.f32.mrb[10].mxu1 }
 0x2f7   :  { %v459_v60 = vpop.f32.mrb[11].mxu1  ;;  %474 = vpow2.f32 %v407_v61 }
 0x301   :  { %v475_v62 = vpop.eup %474 }
 0x302   :  { %v375_v63 = vadd.f32 1.0, %v475_v62 }
 0x304   :  { %476 = vrcp.f32 %v375_v63 }
 0x30e   :  { %v477_v1 = vpop.eup %476 }
 0x3c6   :  { %v306_v2 = vpop.f32.mrb[0].mxu0 }
 0x3c7   :  { %v378_v3 = vmul.f32 %v477_v1, %v306_v2  ;;  %v450_v4 = vpop.f32.mrb[1].mxu0 }
 0x3c8   :  { %v309_v5 = vpop.f32.mrb[2].mxu0 }
 0x3c9   :  { %v379_v6 = vadd.f32 %v378_v3, %v523_v0  ;;  %v451_v7 = vpop.f32.mrb[3].mxu0 }
 0x3cb   :  { %380 = vst.msk [vmem:[%s602_s6] sm:$0xff] %vm28_vm0, %v379_v6 }

// kernel: rwkv_forward.5
= control target key start
LH: loop header
LB: loop body
LE: loop exit
PB: predicated region body
PF: predicated region fallthrough
CT: control target
= control target key end

     0   :  { %vm60_vm0 = vcmask 261120   ;;  %v3031_v7 = vmov 0.0   ;;  %vm3032_vm1 = vmmov 0   ;;  %v75_v10 = vlaneseq  ;;  %s3034_s20 = smov 112   ;;  %s3036_s22 = smov 64   ;;  %s3846_s0 = inlined_call_operand.vmem [shape: f32[1,8,32], index: 0, kind: input, shape index: {}]   ;;  %s3847_s3 = inlined_call_operand.vmem [shape: f32[12,32], index: 3, kind: input, shape index: {}]   ;;  %s3848_s17 = inlined_call_operand.vmem [shape: f32[1,32], index: 17, kind: output, shape index: {1}]   ;;  %s3849_s4 = inlined_call_operand.vmem [shape: bf16[32,80], index: 4, kind: input, shape index: {}]   ;;  %s3850_s1 = inlined_call_operand.vmem [shape: f32[1,32], index: 1, kind: input, shape index: {}]   ;;  %s3851_s5 = inlined_call_operand.vmem [shape: bf16[80,32], index: 5, kind: input, shape index: {}]   ;;  %s3852_s9 = inlined_call_operand.vmem [shape: bf16[32,32], index: 9, kind: input, shape index: {}]   ;;  %s3853_s8 = inlined_call_operand.vmem [shape: bf16[32,32], index: 8, kind: input, shape index: {}]   ;;  %s3854_s11 = inlined_call_operand.vmem [shape: bf16[32,32], index: 11, kind: input, shape index: {}]   ;;  %s3855_s10 = inlined_call_operand.vmem [shape: bf16[32,32], index: 10, kind: input, shape index: {}]   ;;  %s3856_s6 = inlined_call_operand.vmem [shape: bf16[32,16], index: 6, kind: input, shape index: {}]   ;;  %s3857_s13 = inlined_call_operand.vmem [shape: f32[32,32], index: 13, kind: input, shape index: {}]   ;;  %s3858_s7 = inlined_call_operand.vmem [shape: bf16[16,32], index: 7, kind: input, shape index: {}]   ;;  %s3859_s2 = inlined_call_operand.vmem [shape: f32[1,32,32], index: 2, kind: input, shape index: {}]   ;;  %s3860_s18 = inlined_call_operand.vmem [shape: f32[1,32,32], index: 18, kind: output, shape index: {2}]   ;;  %s3861_s14 = inlined_call_operand.vmem [shape: f32[32,4], index: 14, kind: input, shape index: {}]   ;;  %s3862_s15 = inlined_call_operand.vmem [shape: f32[4,32], index: 15, kind: input, shape index: {}]   ;;  %s3863_s12 = inlined_call_operand.vmem [shape: bf16[32,32], index: 12, kind: input, shape index: {}]   ;;  %s3864_s16 = inlined_call_operand.vmem [shape: f32[1,8,32], index: 16, kind: output, shape index: {0}]  }
   0x1   :  { %3868 = sst [smem:[#allocation3_spill]] %s3846_s0  ;;  %2631 = vmatprep.subr.mxu0 %v3031_v7  ;;  %2636 = vmatprep.subr.bf16.mxu1 %v3031_v7  ;;  %vm2471_vm3 = vcmask 261127   ;;  %vm94_vm4 = vcmask 64512   ;;  %v2993_v25 = vld [vmem:[%s3849_s4] sm:$0xff]   ;;  %v2994_v26 = vld [vmem:[%s3849_s4 + $0x8] sm:$0xff]   ;;  %v2997_v38 = vld [vmem:[%s3851_s5 + $0x10] sm:$0xff]  }
   0x2   :  { %3869 = sst [smem:[#allocation4_spill]] %s3847_s3  ;;  %s3871_s29 = sld [smem:[#allocation3_spill]]  ;;  %2633 = vmatprep.mubr.msk.f32.mxu0 %vm3032_vm1, %v3031_v7  ;;  %2640 = vmatprep.mubr.msk.bf16.mxu1 %vm3032_vm1, %v3031_v7  ;;  %v3152_v12 = vshrl.u32 %v75_v10, 7  ;;  %v89_v13 = vand.u32 127, %v75_v10  ;;  %v2487_v28 = vld [vmem:[%s3850_s1] ss:$0 sm:$0xff] }
   0x3   :  { %3870 = sst [smem:[#allocation5_spill]] %s3848_s17  ;;  %s3872_s19 = sld [smem:[#allocation4_spill]]  ;;  %2637 = vmatpush3.bf16.msra.mxu1 %v2993_v25  ;;  %v2995_v37 = vld [vmem:[%s3851_s5] sm:$0xff]   ;;  %vm253_vm6 = vcmask 130048   ;;  %v2996_v45 = vld [vmem:[%s3851_s5 + $0x8] sm:$0xff]   ;;  %v2998_v46 = vld [vmem:[%s3851_s5 + $0x18] sm:$0xff]  }
   0x4   :  { %v3155_v14 = vsub.s32 0, %v3152_v12  ;;  %v3163_v16 = vsub.s32 1, %v3152_v12  ;;  %v90_v17 = vadd.s32 1, %v89_v13  ;;  %s3873_s21 = sld [smem:[#allocation5_spill]]  ;;  %2638 = vmatprep.subr.bf16.mxu1 %v3031_v7  ;;  %v3190_v27 = vsub.s32 2, %v3152_v12  ;;  %s3033_s3 = smov 96  }
   0x5   :  { %vm168_vm5 = vcmp.eq.s32.totalorder %v3152_v12, 0  ;;  %v2999_v47 = vld [vmem:[%s3851_s5 + $0x20] sm:$0xff]   ;;  %v3001_v53 = vld [vmem:[%s3852_s9 + $0x8] sm:$0xff]   ;;  %v519_v60 = vsub.s32 4, %v3152_v12  ;;  %vm1133_vm7 = vcmask 253952   ;;  %vm2166_vm8 = vcmask 1043456  }
   0x6   :  { %vm91_vm2 = vcmp.eq.s32.totalorder %v3152_v12, %v90_v17  ;;  %v3000_v52 = vld [vmem:[%s3852_s9] sm:$0xff]   ;;  %v3004_v55 = vld [vmem:[%s3853_s8 + $0x8] sm:$0xff]   ;;  %vm2162_vm9 = vcmask 31744  }
   0x7   :  { %v2485_v24 = vsel %vm91_vm2, 1.0, %v3031_v7  ;;  %2639 = vmatpush3.bf16.msra.mxu1 %v2994_v26  ;;  %v3002_v54 = vld [vmem:[%s3853_s8] sm:$0xff]  }
   0x8   :  { %v57_v0 = vld [vmem:[%s3871_s29] sm:$0xff]  ;;  %2656 = vmatprep.subr.bf16.mxu1 %v3031_v7 }
   0x9   :  { %v61_v1 = vsel %vm60_vm0, %v57_v0, 0.0  ;;  %v3160_v15 = vld [vmem:[%s3872_s19] sm:$0xff] }
   0xa   :  { %62 = vadd.xlane.f32.xlu0 %v61_v1  ;;  %v78_v18 = vrot.slane %v3160_v15, %v3155_v14  ;;  %v83_v20 = vrot.slane %v3160_v15, %v3163_v16  ;;  %v180_v30 = vrot.slane %v3160_v15, %v3190_v27  ;;  %v520_v61 = vrot.slane %v3160_v15, %v519_v60 }
  0x97   :  { %v63_v2 = vpop.xlane.xlu0 %62 }
  0x98   :  { %v65_v3 = vmul.f32 0.03125, %v63_v2 }
  0x9a   :  { %v66_v4 = vsub.f32 %v57_v0, %v65_v3  ;;  %v533_v3 = vsub.s32 6, %v3152_v12 }
  0x9c   :  { %v67_v5 = vmul.f32 %v66_v4, %v66_v4  ;;  %v534_v17 = vrot.slane %v3160_v15, %v533_v3 }
  0x9e   :  { %v68_v6 = vsel %vm60_vm0, %v67_v5, 0.0 }
  0x9f   :  { %69 = vadd.xlane.f32.xlu0 %v68_v6 }
 0x12c   :  { %v70_v8 = vpop.xlane.xlu0 %69 }
 0x12d   :  { %v71_v9 = vmul.f32 0.03125, %v70_v8 }
 0x12f   :  { %v72_v11 = vadd.f32 1e-05, %v71_v9  ;;  %v526_v9 = vsub.s32 5, %v3152_v12 }
 0x131   :  { %3013 = vrsqrt.f32 %v72_v11 }
 0x13b   :  { %v3014_v19 = vpop.eup %3013 }
 0x13c   :  { %v74_v21 = vmul.f32 %v3014_v19, %v66_v4  ;;  %v3867_v4 = vsub.s32 7, %v3152_v12  ;;  %v3003_v19 = vld [vmem:[%s3854_s11] sm:$0xff]  }
 0x13e   :  { %v79_v22 = vmul.f32 %v78_v18, %v74_v21  ;;  %v541_v18 = vrot.slane %v3160_v15, %v3867_v4  ;;  %v527_v21 = vrot.slane %v3160_v15, %v526_v9 }
 0x140   :  { %v3170_v23 = vadd.f32 %v83_v20, %v79_v22 }
 0x142   :  { %2472 = vst.msk [vmem:[%s3873_s21 - $0x7] sm:$0x80] %vm2471_vm3, %v3170_v23  ;;  %2632 = vmatpush3.msra.mxu0 %v3170_v23  ;;  %s3035_s21 = smov 80  }
 0x143   :  { %2634 = vmatmul.mubr.msk.f32.vlgmr.msra.gmra.mrb[0].mxu0 %vm94_vm4, %v2485_v24  ;;  %2644 = vmatprep.subr.bf16.mxu0 %v3031_v7 }
 0x144   :  { %2646 = vmatprep.mubr.msk.bf16.mxu0 %vm3032_vm1, %v3031_v7  ;;  %2645 = vmatpush3.bf16.msra.mxu0 %v2995_v37 }
 0x145   :  { %2650 = vmatprep.subr.bf16.mxu0 %v3031_v7 }
 0x216   :  { %v164_v29 = vpop.f32.mrb[0].mxu0 }
 0x217   :  { %v175_v31 = vsel %vm168_vm5, %v2487_v28, %v164_v29  ;;  %v2635_v32 = vpop.f32.mrb[1].mxu0 }
 0x218   :  { %v3199_v33 = vsub.f32 %v175_v31, %v3170_v23  ;;  %v3005_v32 = vld [vmem:[%s3854_s11 + $0x8] sm:$0xff]  }
 0x21a   :  { %v181_v34 = vmul.f32 %v180_v30, %v3199_v33 }
 0x21c   :  { %v182_v35 = vadd.f32 %v181_v34, %v3170_v23  ;;  %v3285_v34 = vsub.s32 3, %v3152_v12 }
 0x21e   :  { %v183_v36 = vpack.c.bf16 %v182_v35, %v182_v35 }
 0x220   :  { %2641 = vmatmul.mubr.msk.bf16.vlgmr.msra.gmra.mrb[0].mxu1 %vm60_vm0, %v183_v36 }
 0x221   :  { %2658 = vmatprep.mubr.msk.bf16.mxu1 %vm3032_vm1, %v3031_v7  ;;  %2657 = vmatpush3.bf16.msra.mxu1 %v2997_v38 }
 0x222   :  { %2668 = vmatprep.subr.bf16.mxu1 %v3031_v7 }
 0x2f3   :  { %v237_v39 = vpop.f32.mrb[0].mxu1 }
 0x2f4   :  { %3015 = vtanh.f32 %v237_v39  ;;  %v2642_v40 = vpop.f32.mrb[1].mxu1 }
 0x2f5   :  { %v240_v41 = vpop.f32.mrb[2].mxu1 }
 0x2f6   :  { %v2643_v42 = vpop.f32.mrb[3].mxu1 }
 0x2f7   :  { %v3006_v42 = vld [vmem:[%s3855_s10] sm:$0xff]  }
 0x2fe   :  { %v3016_v43 = vpop.eup %3015 }
 0x2ff   :  { %v246_v44 = vpack.c.bf16 %v3016_v43, %v3016_v43  ;;  %v513_v43 = vrot.slane %v3160_v15, %v3285_v34 }
 0x301   :  { %353 = vrot.lane.b32.xlu0 %v246_v44, %s3033_s3  ;;  %300 = vrot.lane.b32.xlu1 %v246_v44, %s3034_s20 }
 0x302   :  { %2647 = vmatmul.mubr.msk.bf16.vlgmr.msra.gmra.mrb[4].mxu0 %vm253_vm6, %v246_v44 }
 0x303   :  { %2651 = vmatpush3.bf16.msra.mxu0 %v2996_v45  ;;  %2652 = vmatprep.mubr.msk.bf16.mxu0 %vm3032_vm1, %v3031_v7 }
 0x304   :  { %2662 = vmatprep.subr.bf16.mxu0 %v3031_v7 }
 0x305   :  { %406 = vrot.lane.b32.xlu1 %v246_v44, %s3035_s21 }
 0x309   :  { %459 = vrot.lane.b32.xlu1 %v246_v44, %s3036_s22 }
 0x373   :  { %v354_v48 = vpop.permute.xlu0 %353  ;;  %v301_v49 = vpop.permute.xlu1 %300 }
 0x374   :  { %2653 = vmatmul.mubr.msk.bf16.vlgmr.msra.gmra.mrb[8].mxu0 %vm253_vm6, %v301_v49  ;;  %2659 = vmatmul.mubr.msk.bf16.vlgmr.msra.gmra.mrb[4].mxu1 %vm253_vm6, %v354_v48  ;;  %v3008_v49 = vld [vmem:[%s3856_s6] sm:$0xff]  }
 0x375   :  { %2663 = vmatpush3.bf16.msra.mxu0 %v2998_v46  ;;  %2669 = vmatpush3.bf16.msra.mxu1 %v2999_v47  ;;  %v3007_v47 = vld [vmem:[%s3855_s10 + $0x8] sm:$0xff]  }
 0x376   :  { %2670 = vmatprep.mubr.msk.bf16.mxu1 %vm3032_vm1, %v3031_v7  ;;  %2664 = vmatprep.mubr.msk.bf16.mxu0 %vm3032_vm1, %v3031_v7 }
 0x377   :  { %v407_v50 = vpop.permute.xlu1 %406  ;;  %2682 = vmatprep.subr.bf16.mxu1 %v3031_v7  ;;  %2674 = vmatprep.subr.bf16.mxu0 %v3031_v7 }
 0x37b   :  { %v460_v51 = vpop.permute.xlu1 %459 }
 0x37c   :  { %2665 = vmatmul.mubr.msk.bf16.vlgmr.msra.gmra.mrb[12].mxu0 %vm253_vm6, %v407_v50  ;;  %2671 = vmatmul.mubr.msk.bf16.vlgmr.msra.gmra.mrb[8].mxu1 %vm253_vm6, %v460_v51 }
 0x37d   :  { %2686 = vmatprep.mubr.msk.bf16.mxu1 %vm3032_vm1, %v3031_v7  ;;  %2678 = vmatprep.mubr.msk.bf16.mxu0 %vm3032_vm1, %v3031_v7 }
 0x37e   :  { %2683 = vmatpush3.bf16.msra.mxu1 %v3000_v52  ;;  %2675 = vmatpush3.bf16.msra.mxu0 %v3002_v54  ;;  %v3009_v52 = vld [vmem:[%s3856_s6 + $0x8] sm:$0xff]  }
 0x37f   :  { %2684 = vmatprep.subr.bf16.mxu1 %v3031_v7  ;;  %2676 = vmatprep.subr.bf16.mxu0 %v3031_v7 }
 0x382   :  { %2685 = vmatpush3.bf16.msra.mxu1 %v3001_v53  ;;  %2677 = vmatpush3.bf16.msra.mxu0 %v3004_v55  ;;  %v3330_v55 = vld [vmem:[%s3857_s13] sm:$0xff] }
 0x383   :  { %2698 = vmatprep.subr.bf16.mxu1 %v3031_v7  ;;  %2690 = vmatprep.subr.bf16.mxu0 %v3031_v7 }
 0x3d5   :  { %v291_v56 = vpop.f32.mrb[4].mxu0 }
 0x3d6   :  { %v2648_v57 = vpop.f32.mrb[5].mxu0  ;;  %v514_v48 = vadd.f32 %v513_v43, %v291_v56 }
 0x3d7   :  { %v294_v58 = vpop.f32.mrb[6].mxu0  ;;  %v3343_v57 = vld [vmem:[%s3857_s13 + $0x10] sm:$0xff] }
 0x3d8   :  { %v2649_v59 = vpop.f32.mrb[7].mxu0  ;;  %v515_v50 = vmul.f32 %v514_v48, %v3199_v33  ;;  %v3348_v58 = vld [vmem:[%s3857_s13 + $0x18] sm:$0xff]  ;;  %v3043_v48 = vmov 3  }
 0x3d9   :  { %v2863_v59 = vpack.c.bf16 %v3348_v58, %v3343_v57 }
 0x3da   :  { %v516_v53 = vadd.f32 %v515_v50, %v3170_v23 }
 0x3dc   :  { %v785_v54 = vpack.c.bf16 %v516_v53, %v516_v53 }
 0x447   :  { %v345_v62 = vpop.f32.mrb[8].mxu0  ;;  %v398_v63 = vpop.f32.mrb[4].mxu1 }
 0x448   :  { %v521_v0 = vadd.f32 %v520_v61, %v345_v62  ;;  %v2654_v1 = vpop.f32.mrb[9].mxu0  ;;  %v2660_v2 = vpop.f32.mrb[5].mxu1  ;;  %v528_v35 = vadd.f32 %v527_v21, %v398_v63  ;;  %v3010_v61 = vld [vmem:[%s3858_s7] sm:$0xff]   ;;  %v3038_v62 = vmov 2  }
 0x449   :  { %v348_v5 = vpop.f32.mrb[10].mxu0  ;;  %v401_v6 = vpop.f32.mrb[6].mxu1  ;;  %2942 = vset.pattern.permute.xlu0 %v3038_v62  ;;  %v3361_v1 = vld [vmem:[%s3872_s19 + $0x8] sm:$0xf] }
 0x44a   :  { %v522_v8 = vmul.f32 %v521_v0, %v3199_v33  ;;  %v2655_v10 = vpop.f32.mrb[11].mxu0  ;;  %v2661_v11 = vpop.f32.mrb[7].mxu1  ;;  %v529_v44 = vmul.f32 %v528_v35, %v3199_v33  ;;  %v915_v6 = vrot.slane %v3361_v1, %v3163_v16  ;;  %v3039_v35 = vmov 0  }
 0x44c   :  { %v523_v13 = vadd.f32 %v522_v8, %v3170_v23  ;;  %v530_v15 = vadd.f32 %v529_v44, %v3170_v23 }
 0x44e   :  { %v605_v20 = vpack.c.bf16 %v523_v13, %v523_v13  ;;  %v665_v51 = vpack.c.bf16 %v530_v15, %v530_v15 }
 0x44f   :  { %v451_v22 = vpop.f32.mrb[12].mxu0  ;;  %v504_v24 = vpop.f32.mrb[8].mxu1 }
 0x450   :  { %v535_v25 = vadd.f32 %v534_v17, %v451_v22  ;;  %v542_v26 = vadd.f32 %v541_v18, %v504_v24  ;;  %v2666_v28 = vpop.f32.mrb[13].mxu0  ;;  %v2672_v29 = vpop.f32.mrb[9].mxu1  ;;  %2687 = vmatmul.mubr.msk.bf16.vlgmr.msra.gmra.mrb[12].mxu1 %vm60_vm0, %v605_v20 }
 0x451   :  { %v454_v30 = vpop.f32.mrb[14].mxu0  ;;  %v507_v31 = vpop.f32.mrb[10].mxu1  ;;  %2699 = vmatpush3.bf16.msra.mxu1 %v3003_v19  ;;  %2702 = vmatprep.mubr.msk.bf16.mxu1 %vm3032_vm1, %v3031_v7 }
 0x452   :  { %v536_v36 = vmul.f32 %v535_v25, %v3199_v33  ;;  %v543_v37 = vmul.f32 %v542_v26, %v3199_v33  ;;  %v2667_v38 = vpop.f32.mrb[15].mxu0  ;;  %v2673_v39 = vpop.f32.mrb[11].mxu1  ;;  %2700 = vmatprep.subr.bf16.mxu1 %v3031_v7  ;;  %v3037_v33 = vmov 0.0|0.0  }
 0x454   :  { %v537_v40 = vadd.f32 %v536_v36, %v3170_v23  ;;  %v544_v41 = vadd.f32 %v543_v37, %v3170_v23  ;;  %v3335_v23 = vld [vmem:[%s3857_s13 + $0x8] sm:$0xff]  ;;  %v3379_v36 = vld [vmem:[%s3859_s2] sm:$0xff] }
 0x455   :  { %2701 = vmatpush3.bf16.msra.mxu1 %v3005_v32  ;;  %v2860_v56 = vpack.c.bf16 %v3335_v23, %v3330_v55  ;;  %v3384_v37 = vld [vmem:[%s3859_s2 + $0x8] sm:$0xff] }
 0x456   :  { %v545_v45 = vpack.c.bf16 %v537_v40, %v537_v40  ;;  %v725_v46 = vpack.c.bf16 %v544_v41, %v544_v41  ;;  %2714 = vmatprep.subr.bf16.mxu1 %v3031_v7  ;;  %v2866_v39 = vpack.c.bf16 %v3384_v37, %v3379_v36  ;;  %v3391_v41 = vld [vmem:[%s3859_s2 + $0x10] sm:$0xff] }
 0x458   :  { %2679 = vmatmul.mubr.msk.bf16.vlgmr.msra.gmra.mrb[16].mxu0 %vm60_vm0, %v545_v45  ;;  %2703 = vmatmul.mubr.msk.bf16.vlgmr.msra.gmra.mrb[16].mxu1 %vm60_vm0, %v725_v46  ;;  %v3040_v45 = vmov 4   ;;  %v3041_v46 = vmov 1  }
 0x459   :  { %2691 = vmatpush3.bf16.msra.mxu0 %v3006_v42  ;;  %2694 = vmatprep.mubr.msk.bf16.mxu0 %vm3032_vm1, %v3031_v7  ;;  %v3396_v42 = vld [vmem:[%s3859_s2 + $0x18] sm:$0xff] }
 0x45a   :  { %2692 = vmatprep.subr.bf16.mxu0 %v3031_v7  ;;  %2716 = vmatprep.mubr.msk.bf16.mxu1 %vm3032_vm1, %v3031_v7  ;;  %v2869_v43 = vpack.c.bf16 %v3396_v42, %v3391_v41 }
 0x45b   :  { %2715 = vmatpush3.bf16.msra.mxu1 %v3010_v61 }
 0x45c   :  { %2865 = vmatprep.subr.bf16.mxu1 %v3037_v33 }
 0x45d   :  { %2693 = vmatpush3.bf16.msra.mxu0 %v3007_v47  ;;  %v3042_v47 = vmov 6  }
 0x45e   :  { %2706 = vmatprep.subr.bf16.mxu0 %v3031_v7 }
 0x460   :  { %2695 = vmatmul.mubr.msk.bf16.vlgmr.msra.gmra.mrb[20].mxu0 %vm60_vm0, %v665_v51 }
 0x461   :  { %2707 = vmatpush3.bf16.msra.mxu0 %v3008_v49  ;;  %2710 = vmatprep.mubr.msk.bf16.mxu0 %vm3032_vm1, %v3031_v7  ;;  %v3044_v49 = vmov 5  }
 0x462   :  { %2708 = vmatprep.subr.bf16.mxu0 %v3031_v7 }
 0x465   :  { %2709 = vmatpush3.bf16.msra.mxu0 %v3009_v52 }
 0x466   :  { %2859 = vmatprep.subr.bf16.mxu0 %v3037_v33 }
 0x468   :  { %2711 = vmatmul.mubr.msk.bf16.vlgmr.msra.gmra.mrb[24].mxu0 %vm60_vm0, %v785_v54 }
 0x469   :  { %2728 = vmatprep.mubr.msk.f32.mxu0 %vm3032_vm1, %v3031_v7  ;;  %2861 = vmatpush3.bf16.msra.mxu0 %v2860_v56  ;;  %v901_v56 = vrot.slane %v3361_v1, %v3155_v14 }
 0x46a   :  { %2862 = vmatprep.subr.bf16.mxu0 %v3037_v33 }
 0x46d   :  { %2864 = vmatpush3.bf16.msra.mxu0 %v2863_v59 }
 0x46e   :  { %2871 = vmatprep.subr.bf16.mxu0 %v3037_v33 }
 0x523   :  { %v659_v63 = vpop.f32.mrb[12].mxu1 }
 0x524   :  { %992 = vxpose.xlu1.b32.start.end [1/1] (short) (narrow) %v659_v63, 32  ;;  %v2688_v0 = vpop.f32.mrb[13].mxu1 }
 0x525   :  { %v662_v2 = vpop.f32.mrb[14].mxu1 }
 0x526   :  { %v2689_v5 = vpop.f32.mrb[15].mxu1 }
 0x52b   :  { %v3365_v8 = vpop.f32.mrb[16].mxu0  ;;  %v3367_v10 = vpop.f32.mrb[16].mxu1 }
 0x52c   :  { %v2680_v11 = vpop.f32.mrb[17].mxu0  ;;  %v2704_v13 = vpop.f32.mrb[17].mxu1  ;;  %v916_v17 = vmul.f32 %v915_v6, %v3365_v8 }
 0x52d   :  { %v602_v18 = vpop.f32.mrb[18].mxu0  ;;  %v782_v19 = vpop.f32.mrb[18].mxu1 }
 0x52e   :  { %v2681_v20 = vpop.f32.mrb[19].mxu0  ;;  %v2705_v21 = vpop.f32.mrb[19].mxu1  ;;  %v917_v22 = vmul.f32 %v916_v17, %v659_v63 }
 0x530   :  { %2729 = vmatmul.mubr.msk.f32.vlgmr.msra.gmra.mrb[2].mxu0 %vm60_vm0, %v917_v22 }
 0x531   :  { %2750 = vmatprep.mubr.msk.f32.mxu0 %vm3032_vm1, %v3031_v7 }
 0x533   :  { %v3373_v24 = vpop.f32.mrb[20].mxu0 }
 0x534   :  { %v2696_v25 = vpop.f32.mrb[21].mxu0  ;;  %v1434_v6 = vrot.slane %v3373_v24, %v3190_v27  ;;  %v1182_v11 = vrot.slane %v3373_v24, %v3155_v14  ;;  %v1686_v21 = vrot.slane %v3373_v24, %v519_v60  ;;  %v1308_v22 = vrot.slane %v3373_v24, %v3163_v16 }
 0x535   :  { %v722_v26 = vpop.f32.mrb[22].mxu0 }
 0x536   :  { %v2697_v28 = vpop.f32.mrb[23].mxu0 }
 0x53b   :  { %v839_v29 = vpop.f32.mrb[24].mxu0 }
 0x53c   :  { %3017 = vtanh.f32 %v839_v29  ;;  %v2712_v30 = vpop.f32.mrb[25].mxu0 }
 0x53d   :  { %v842_v31 = vpop.f32.mrb[26].mxu0 }
 0x53e   :  { %v2713_v32 = vpop.f32.mrb[27].mxu0  ;;  %v3489_v31 = vrot.slane %v3373_v24, %v533_v3 }
 0x53f   :  { %v3493_v32 = vrot.slane %v3373_v24, %v3285_v34 }
 0x542   :  { %2940 = vset.pattern.permute.xlu1 %v3039_v35 }
 0x546   :  { %v3018_v38 = vpop.eup %3017 }
 0x547   :  { %v846_v40 = vpack.c.bf16 %v3018_v38, %v3018_v38 }
 0x549   :  { %2717 = vmatmul.mubr.msk.bf16.vlgmr.msra.gmra.mrb[20].mxu1 %vm253_vm6, %v846_v40 }
 0x54a   :  { %2867 = vmatpush3.bf16.msra.mxu1 %v2866_v39  ;;  %2739 = vmatprep.mubr.msk.f32.mxu1 %vm3032_vm1, %v3031_v7 }
 0x54b   :  { %2868 = vmatprep.subr.bf16.mxu1 %v3037_v33 }
 0x54e   :  { %2870 = vmatpush3.bf16.msra.mxu1 %v2869_v43  ;;  %v3504_v43 = vrot.slane %v3373_v24, %v526_v9 }
 0x54f   :  { %2877 = vmatprep.subr.bf16.mxu1 %v3037_v33 }
 0x551   :  { %2740 = vmatmul.mubr.msk.f32.vlgmr.msra.gmra.mrb[24].mxu1 %vm60_vm0, %v3365_v8 }
 0x552   :  { %2761 = vmatprep.mubr.msk.f32.mxu1 %vm3032_vm1, %v3031_v7 }
 0x5a4   :  { %v3409_v44 = vpop.trf.xlu1 }
 0x5a5   :  { %1416 = vperm.xlu0 %2942, %v3409_v44   ;;  %1161 = vperm.xlu1 %2940, %v3409_v44  }
 0x5a8   :  { %v3421_v15 = vpop.trf.xlu1 }
 0x5a9   :  { %2944 = vset.pattern.permute.xlu0 %v3040_v45  ;;  %2941 = vset.pattern.permute.xlu1 %v3041_v46 }
 0x5aa   :  { %1668 = vperm.xlu0 %2944, %v3409_v44   ;;  %1290 = vperm.xlu1 %2941, %v3409_v44  }
 0x5ac   :  { %v3435_v50 = vpop.trf.xlu1 }
 0x5ae   :  { %2946 = vset.pattern.permute.xlu0 %v3042_v47  ;;  %2943 = vset.pattern.permute.xlu1 %v3043_v48 }
 0x5af   :  { %1920 = vperm.xlu0 %2946, %v3409_v44   ;;  %1542 = vperm.xlu1 %2943, %v3409_v44  }
 0x5b0   :  { %v3445_v51 = vpop.trf.xlu1 }
 0x5b3   :  { %2947 = vset.pattern.permute.xlu0 %v3039_v35  ;;  %2945 = vset.pattern.permute.xlu1 %v3044_v49 }
 0x5b4   :  { %1794 = vperm.xlu1 %2945, %v3409_v44   ;;  %1166 = vperm.xlu0 %2947, %v3421_v15  }
 0x5b8   :  { %2949 = vset.pattern.permute.xlu1 %v3038_v62  ;;  %2948 = vset.pattern.permute.xlu0 %v3041_v46 }
 0x5b9   :  { %1420 = vperm.xlu1 %2949, %v3421_v15   ;;  %1294 = vperm.xlu0 %2948, %v3421_v15  }
 0x5bd   :  { %2950 = vset.pattern.permute.xlu1 %v3040_v45  ;;  %2951 = vset.pattern.permute.xlu0 %v3044_v49 }
 0x5be   :  { %1672 = vperm.xlu1 %2950, %v3421_v15   ;;  %1798 = vperm.xlu0 %2951, %v3421_v15  }
 0x5c2   :  { %2952 = vset.pattern.permute.xlu1 %v3042_v47  ;;  %2954 = vset.pattern.permute.xlu0 %v3041_v46 }
 0x5c3   :  { %1924 = vperm.xlu1 %2952, %v3421_v15   ;;  %1298 = vperm.xlu0 %2954, %v3435_v50  }
 0x5c7   :  { %2953 = vset.pattern.permute.xlu1 %v3039_v35  ;;  %2955 = vset.pattern.permute.xlu0 %v3038_v62 }
 0x5c8   :  { %1424 = vperm.xlu0 %2955, %v3435_v50   ;;  %1171 = vperm.xlu1 %2953, %v3435_v50  }
 0x5cc   :  { %2956 = vset.pattern.permute.xlu0 %v3040_v45  ;;  %1176 = vperm.xlu1 %2953, %v3445_v51  }
 0x5cd   :  { %1676 = vperm.xlu0 %2956, %v3435_v50  }
 0x5d0   :  { %2958 = vset.pattern.permute.xlu1 %v3041_v46 }
 0x5d1   :  { %2957 = vset.pattern.permute.xlu0 %v3044_v49  ;;  %1302 = vperm.xlu1 %2958, %v3445_v51  }
 0x5d2   :  { %1802 = vperm.xlu0 %2957, %v3435_v50  }
 0x5d5   :  { %2959 = vset.pattern.permute.xlu1 %v3038_v62 }
 0x5d6   :  { %1428 = vperm.xlu1 %2959, %v3445_v51  }
 0x5da   :  { %2960 = vset.pattern.permute.xlu1 %v3043_v48 }
 0x5db   :  { %1554 = vperm.xlu1 %2960, %v3445_v51  }
 0x5df   :  { %2961 = vset.pattern.permute.xlu1 %v3040_v45 }
 0x5e0   :  { %1680 = vperm.xlu1 %2961, %v3445_v51  }
 0x5e4   :  { %2962 = vset.pattern.permute.xlu1 %v3044_v49 }
 0x5e5   :  { %1806 = vperm.xlu1 %2962, %v3445_v51  }
 0x5e9   :  { %2963 = vset.pattern.permute.xlu1 %v3039_v35 }
 0x603   :  { %v987_v52 = vpop.f32.mrb[2].mxu0 }
 0x604   :  { %v3464_v53 = vmul.f32 %v987_v52, %v3373_v24  ;;  %v2730_v54 = vpop.f32.mrb[3].mxu0 }
 0x61c   :  { %v892_v59 = vpop.f32.mrb[20].mxu1 }
 0x61d   :  { %v902_v61 = vadd.f32 %v901_v56, %v892_v59  ;;  %v2718_v63 = vpop.f32.mrb[21].mxu1 }
 0x61e   :  { %v895_v0 = vpop.f32.mrb[22].mxu1 }
 0x61f   :  { %v903_v2 = vmul.f32 1.442695, %v902_v61  ;;  %v2719_v5 = vpop.f32.mrb[23].mxu1 }
 0x621   :  { %3019 = vpow2.f32 %v903_v2 }
 0x624   :  { %v1417_v13 = vpop.permute.xlu0 %1416  ;;  %v1162_v17 = vpop.permute.xlu1 %1161 }
 0x625   :  { %v3472_v18 = vmul.f32 %v1434_v6, %v1417_v13  ;;  %v3474_v19 = vmul.f32 %v1182_v11, %v1162_v17  ;;  %v1129_v1 = vpop.f32.mrb[24].mxu1 }
 0x626   :  { %1134 = vst.msk [vmem:[#allocation2] sm:$0x1] %vm1133_vm7, %v1129_v1  ;;  %v2741_v20 = vpop.f32.mrb[25].mxu1 }
 0x629   :  { %v1669_v25 = vpop.permute.xlu0 %1668  ;;  %v1291_v14 = vpop.permute.xlu1 %1290 }
 0x62a   :  { %v3482_v26 = vmul.f32 %v1686_v21, %v1669_v25  ;;  %v3484_v28 = vmul.f32 %v1308_v22, %v1291_v14 }
 0x62b   :  { %v3020_v29 = vpop.eup %3019 }
 0x62c   :  { %v905_v30 = vsub.f32 0.0, %v3020_v29 }
 0x62e   :  { %v906_v60 = vmul.f32 1.442695, %v905_v30  ;;  %v1921_v38 = vpop.permute.xlu0 %1920  ;;  %v1543_v16 = vpop.permute.xlu1 %1542 }
 0x62f   :  { %v3496_v39 = vmul.f32 %v3489_v31, %v1921_v38  ;;  %v3499_v40 = vmul.f32 %v3493_v32, %v1543_v16 }
 0x630   :  { %3021 = vpow2.f32 %v906_v60 }
 0x633   :  { %v1167_v3 = vpop.permute.xlu0 %1166  ;;  %v1795_v52 = vpop.permute.xlu1 %1794 }
 0x634   :  { %v3506_v54 = vmul.f32 %v1182_v11, %v1167_v3  ;;  %v3509_v56 = vmul.f32 %v3504_v43, %v1795_v52 }
 0x638   :  { %v1295_v59 = vpop.permute.xlu0 %1294  ;;  %v1421_v61 = vpop.permute.xlu1 %1420 }
 0x639   :  { %v3511_v63 = vmul.f32 %v1308_v22, %v1295_v59  ;;  %v3513_v0 = vmul.f32 %v1434_v6, %v1421_v61 }
 0x63a   :  { %v3022_v2 = vpop.eup %3021 }
 0x63b   :  { %1024 = vxpose.xlu0.b32.start.end [1/1] (short) (narrow) %v3022_v2, 32 }
 0x63d   :  { %v1799_v5 = vpop.permute.xlu0 %1798  ;;  %v1673_v13 = vpop.permute.xlu1 %1672 }
 0x63e   :  { %v3516_v9 = vmul.f32 %v3504_v43, %v1799_v5  ;;  %v3518_v17 = vmul.f32 %v1686_v21, %v1673_v13 }
 0x642   :  { %v1299_v1 = vpop.permute.xlu0 %1298  ;;  %v1925_v20 = vpop.permute.xlu1 %1924 }
 0x643   :  { %v3520_v25 = vmul.f32 %v1308_v22, %v1299_v1  ;;  %v3523_v14 = vmul.f32 %v3489_v31, %v1925_v20 }
 0x647   :  { %v1425_v29 = vpop.permute.xlu0 %1424  ;;  %v1172_v30 = vpop.permute.xlu1 %1171 }
 0x648   :  { %v3525_v60 = vmul.f32 %v1434_v6, %v1425_v29  ;;  %v3527_v38 = vmul.f32 %v1182_v11, %v1172_v30 }
 0x64b   :  { %v1177_v16 = vpop.permute.xlu1 %1176 }
 0x64c   :  { %v3529_v3 = vmul.f32 %v1182_v11, %v1177_v16  ;;  %v1677_v52 = vpop.permute.xlu0 %1676 }
 0x64d   :  { %v3531_v59 = vmul.f32 %v1686_v21, %v1677_v52  ;;  %v1439_v52 = vmul.f32 %v3472_v18, %v3330_v55  ;;  %v1314_v18 = vmul.f32 %v3511_v63, %v3335_v23 }
 0x650   :  { %v1303_v61 = vpop.permute.xlu1 %1302 }
 0x651   :  { %v3533_v2 = vmul.f32 %v1308_v22, %v1303_v61  ;;  %v3543_v11 = vpop.permute.xlu0 %1802  ;;  %v3045_v22 = vmov 7  }
 0x655   :  { %v1429_v5 = vpop.permute.xlu1 %1428 }
 0x656   :  { %v3535_v13 = vmul.f32 %v1434_v6, %v1429_v5 }
 0x65a   :  { %v1555_v1 = vpop.permute.xlu1 %1554 }
 0x65b   :  { %v3538_v20 = vmul.f32 %v3493_v32, %v1555_v1 }
 0x65f   :  { %v1681_v29 = vpop.permute.xlu1 %1680 }
 0x660   :  { %v3540_v4 = vmul.f32 %v1686_v21, %v1681_v29 }
 0x664   :  { %2964 = vset.pattern.permute.xlu0 %v3041_v46 }
 0x6bb   :  { %v1040_v30 = vpop.trf.xlu0 }
 0x6bc   :  { %1270 = vperm.xlu0 %2964, %v1040_v30   ;;  %1137 = vperm.xlu1 %2963, %v1040_v30  }
 0x6bf   :  { %v3545_v16 = vpop.trf.xlu0 }
 0x6c0   :  { %2967 = vset.pattern.permute.xlu0 %v3044_v49  ;;  %2965 = vset.pattern.permute.xlu1 %v3038_v62 }
 0x6c1   :  { %1774 = vperm.xlu0 %2967, %v1040_v30   ;;  %1396 = vperm.xlu1 %2965, %v1040_v30  }
 0x6c3   :  { %v1042_v6 = vpop.trf.xlu0 }
 0x6c5   :  { %2966 = vset.pattern.permute.xlu1 %v3040_v45  ;;  %2982 = vset.pattern.permute.xlu0 %v3041_v46 }
 0x6c6   :  { %1648 = vperm.xlu1 %2966, %v1040_v30  }
 0x6c7   :  { %v1043_v21 = vpop.trf.xlu0 }
 0x6c8   :  { %1282 = vperm.xlu0 %2982, %v1043_v21  }
 0x6ca   :  { %2968 = vset.pattern.permute.xlu1 %v3039_v35 }
 0x6cb   :  { %1142 = vperm.xlu1 %2968, %v3545_v16  }
 0x6cc   :  { %2985 = vset.pattern.permute.xlu0 %v3042_v47 }
 0x6cd   :  { %1928 = vperm.xlu0 %2985, %v3435_v50  }
 0x6cf   :  { %2969 = vset.pattern.permute.xlu1 %v3041_v46 }
 0x6d0   :  { %1274 = vperm.xlu1 %2969, %v3545_v16  }
 0x6d1   :  { %2986 = vset.pattern.permute.xlu0 %v3043_v48 }
 0x6d2   :  { %1546 = vperm.xlu0 %2986, %v3421_v15  }
 0x6d4   :  { %2970 = vset.pattern.permute.xlu1 %v3038_v62 }
 0x6d5   :  { %1400 = vperm.xlu1 %2970, %v3545_v16  }
 0x6d6   :  { %1522 = vperm.xlu0 %2986, %v1040_v30  }
 0x6d9   :  { %2971 = vset.pattern.permute.xlu1 %v3043_v48 }
 0x6da   :  { %1526 = vperm.xlu1 %2971, %v3545_v16   ;;  %1550 = vperm.xlu0 %2986, %v3435_v50  }
 0x6de   :  { %2972 = vset.pattern.permute.xlu1 %v3040_v45  ;;  %1534 = vperm.xlu0 %2986, %v1043_v21  }
 0x6df   :  { %1652 = vperm.xlu1 %2972, %v3545_v16  }
 0x6e2   :  { %2989 = vset.pattern.permute.xlu0 %v3044_v49 }
 0x6e3   :  { %2973 = vset.pattern.permute.xlu1 %v3044_v49  ;;  %1786 = vperm.xlu0 %2989, %v1043_v21  }
 0x6e4   :  { %1778 = vperm.xlu1 %2973, %v3545_v16  }
 0x6e7   :  { %2990 = vset.pattern.permute.xlu0 %v3042_v47 }
 0x6e8   :  { %2974 = vset.pattern.permute.xlu1 %v3039_v35  ;;  %1912 = vperm.xlu0 %2990, %v1043_v21  }
 0x6e9   :  { %1147 = vperm.xlu1 %2974, %v1042_v6  }
 0x6ec   :  { %2992 = vset.pattern.permute.xlu0 %v3045_v22 }
 0x6ed   :  { %2975 = vset.pattern.permute.xlu1 %v3041_v46  ;;  %2050 = vperm.xlu0 %2992, %v3421_v15  }
 0x6ee   :  { %1278 = vperm.xlu1 %2975, %v1042_v6  }
 0x6f1   :  { %2026 = vperm.xlu0 %2992, %v1040_v30  }
 0x6f2   :  { %2976 = vset.pattern.permute.xlu1 %v3038_v62 }
 0x6f3   :  { %1404 = vperm.xlu1 %2976, %v1042_v6  }
 0x6f5   :  { %2034 = vperm.xlu0 %2992, %v1042_v6  }
 0x6f7   :  { %2977 = vset.pattern.permute.xlu1 %v3043_v48 }
 0x6f8   :  { %1530 = vperm.xlu1 %2977, %v1042_v6  }
 0x6fc   :  { %2978 = vset.pattern.permute.xlu1 %v3040_v45 }
 0x6fd   :  { %1656 = vperm.xlu1 %2978, %v1042_v6  }
 0x701   :  { %2979 = vset.pattern.permute.xlu1 %v3044_v49 }
 0x702   :  { %1782 = vperm.xlu1 %2979, %v1042_v6  }
 0x706   :  { %2980 = vset.pattern.permute.xlu1 %v3039_v35 }
 0x707   :  { %1152 = vperm.xlu1 %2980, %v1043_v21  }
 0x70b   :  { %2981 = vset.pattern.permute.xlu1 %v3042_v47 }
 0x70c   :  { %1900 = vperm.xlu1 %2981, %v1040_v30  }
 0x710   :  { %2983 = vset.pattern.permute.xlu1 %v3038_v62  ;;  %v3589_v62 = vpop.permute.xlu1 %1806 }
 0x711   :  { %1408 = vperm.xlu1 %2983, %v1043_v21  }
 0x715   :  { %2984 = vset.pattern.permute.xlu1 %v3042_v47 }
 0x716   :  { %1904 = vperm.xlu1 %2984, %v3545_v16  }
 0x71a   :  { %2987 = vset.pattern.permute.xlu1 %v3040_v45  ;;  %v1187_v45 = vmul.f32 %v3474_v19, %v3330_v55 }
 0x71b   :  { %1660 = vperm.xlu1 %2987, %v1043_v21  }
 0x71f   :  { %2988 = vset.pattern.permute.xlu1 %v3042_v47 }
 0x720   :  { %1932 = vperm.xlu1 %2988, %v3445_v51  }
 0x724   :  { %1908 = vperm.xlu1 %2988, %v1042_v6  }
 0x728   :  { %2991 = vset.pattern.permute.xlu1 %v3045_v22 }
 0x729   :  { %2046 = vperm.xlu1 %2991, %v3409_v44   ;;  %v1313_v44 = vmul.f32 %v3484_v28, %v3330_v55 }
 0x72d   :  { %2054 = vperm.xlu1 %2991, %v3435_v50  }
 0x731   :  { %2058 = vperm.xlu1 %2991, %v3445_v51  }
 0x735   :  { %2030 = vperm.xlu1 %2991, %v3545_v16  }
 0x739   :  { %2038 = vperm.xlu1 %2991, %v1043_v21  }
 0x73b   :  { %v1138_v35 = vpop.permute.xlu1 %1137  ;;  %v1271_v47 = vpop.permute.xlu0 %1270 }
 0x73c   :  { %v1155_v46 = vmul.f32 %v1138_v35, %v3379_v36  ;;  %v1188_v36 = vmul.f32 %v3506_v54, %v3335_v23  ;;  %v1440_v54 = vmul.f32 %v3513_v0, %v3335_v23 }
 0x73e   :  { %v1191_v48 = vadd.f32 %v1187_v45, %v1155_v46 }
 0x740   :  { %v1285_v15 = vmul.f32 %v1271_v47, %v1191_v48  ;;  %v1397_v49 = vpop.permute.xlu1 %1396  ;;  %v1775_v51 = vpop.permute.xlu0 %1774 }
 0x742   :  { %v1317_v50 = vadd.f32 %v1313_v44, %v1285_v15 }
 0x744   :  { %v1411_v61 = vmul.f32 %v1397_v49, %v1317_v50 }
 0x745   :  { %v1649_v5 = vpop.permute.xlu1 %1648 }
 0x746   :  { %v3598_v1 = vadd.f32 %v1439_v52, %v1411_v61  ;;  %v1691_v61 = vmul.f32 %v3482_v26, %v3330_v55  ;;  %v1692_v26 = vmul.f32 %v3518_v17, %v3335_v23 }
 0x747   :  { %v3600_v29 = vpop.permute.xlu0 %1282 }
 0x74a   :  { %v1143_v19 = vpop.permute.xlu1 %1142 }
 0x74b   :  { %v1156_v30 = vmul.f32 %v1143_v19, %v3384_v37 }
 0x74c   :  { %v3605_v28 = vpop.permute.xlu0 %1928 }
 0x74d   :  { %v1192_v16 = vadd.f32 %v1188_v36, %v1156_v30 }
 0x74f   :  { %v2872_v6 = vpack.c.bf16 %v1192_v16, %v1191_v48  ;;  %v1275_v21 = vpop.permute.xlu1 %1274  ;;  %v1565_v48 = vmul.f32 %v3499_v40, %v3330_v55 }
 0x750   :  { %v1286_v22 = vmul.f32 %v1275_v21, %v1192_v16 }
 0x751   :  { %2873 = vmatpush3.bf16.msra.mxu0 %v2872_v6  ;;  %v1547_v35 = vpop.permute.xlu0 %1546  ;;  %v1817_v6 = vmul.f32 %v3509_v56, %v3330_v55  ;;  %v1818_v56 = vmul.f32 %v3516_v9, %v3335_v23 }
 0x752   :  { %v1318_v45 = vadd.f32 %v1314_v18, %v1286_v22  ;;  %2874 = vmatprep.subr.bf16.mxu0 %v3037_v33  ;;  %v1562_v15 = vmul.f32 %v3493_v32, %v1547_v35 }
 0x754   :  { %v1401_v46 = vpop.permute.xlu1 %1400  ;;  %v2878_v47 = vpack.c.bf16 %v1318_v45, %v1317_v50  ;;  %v1566_v40 = vmul.f32 %v1562_v15, %v3335_v23 }
 0x755   :  { %v1412_v37 = vmul.f32 %v1401_v46, %v1318_v45  ;;  %v1523_v44 = vpop.permute.xlu0 %1522 }
 0x756   :  { %v1537_v63 = vmul.f32 %v1523_v44, %v3598_v1  ;;  %2879 = vmatpush3.bf16.msra.mxu1 %v2878_v47  ;;  %v1189_v44 = vmul.f32 %v3527_v38, %v3343_v57 }
 0x757   :  { %v3616_v49 = vadd.f32 %v1440_v54, %v1412_v37  ;;  %2880 = vmatprep.subr.bf16.mxu1 %v3037_v33 }
 0x758   :  { %v3619_v52 = vadd.f32 %v1565_v48, %v1537_v63 }
 0x759   :  { %v1527_v50 = vpop.permute.xlu1 %1526  ;;  %v2884_v0 = vpack.c.bf16 %v3616_v49, %v3598_v1 }
 0x75a   :  { %v1663_v19 = vmul.f32 %v1649_v5, %v3619_v52  ;;  %v1538_v36 = vmul.f32 %v1527_v50, %v3616_v49  ;;  %v1315_v50 = vmul.f32 %v3520_v25, %v3343_v57  ;;  %v1693_v25 = vmul.f32 %v3531_v59, %v3343_v57 }
 0x75b   :  { %v1944_v49 = vmul.f32 %v3523_v14, %v3335_v23  ;;  %v1694_v14 = vmul.f32 %v3540_v4, %v3348_v58 }
 0x75c   :  { %v3628_v30 = vadd.f32 %v1566_v40, %v1538_v36  ;;  %v3630_v16 = vadd.f32 %v1691_v61, %v1663_v19  ;;  %v1551_v40 = vpop.permute.xlu0 %1550  ;;  %v1441_v36 = vmul.f32 %v3525_v60, %v3343_v57 }
 0x75e   :  { %v1653_v21 = vpop.permute.xlu1 %1652  ;;  %v2890_v18 = vpack.c.bf16 %v3628_v30, %v3619_v52  ;;  %v1789_v22 = vmul.f32 %v1775_v51, %v3630_v16 }
 0x75f   :  { %v1664_v5 = vmul.f32 %v1653_v21, %v3628_v30  ;;  %v1563_v21 = vmul.f32 %v3493_v32, %v1551_v40  ;;  %v1316_v40 = vmul.f32 %v3533_v2, %v3348_v58 }
 0x760   :  { %v3640_v35 = vadd.f32 %v1817_v6, %v1789_v22 }
 0x761   :  { %v3642_v45 = vadd.f32 %v1692_v26, %v1664_v5  ;;  %v1567_v38 = vmul.f32 %v1563_v21, %v3343_v57 }
 0x763   :  { %v1779_v46 = vpop.permute.xlu1 %1778  ;;  %v2896_v47 = vpack.c.bf16 %v3642_v45, %v3630_v16 }
 0x764   :  { %v1790_v54 = vmul.f32 %v1779_v46, %v3642_v45  ;;  %v1941_v45 = vmul.f32 %v3489_v31, %v3605_v28 }
 0x766   :  { %v3649_v37 = vadd.f32 %v1818_v56, %v1790_v54  ;;  %v1815_v54 = vmul.f32 %v3504_v43, %v3543_v11 }
 0x768   :  { %v1148_v51 = vpop.permute.xlu1 %1147  ;;  %v2902_v17 = vpack.c.bf16 %v3649_v37, %v3640_v35 }
 0x769   :  { %v1157_v48 = vmul.f32 %v1148_v51, %v3391_v41 }
 0x76b   :  { %v1193_v15 = vadd.f32 %v1189_v44, %v1157_v48  ;;  %v1819_v44 = vmul.f32 %v1815_v54, %v3343_v57  ;;  %v1447_v54 = vrot.slane %v3365_v8, 3 }
 0x76d   :  { %v1279_v63 = vpop.permute.xlu1 %1278 }
 0x76e   :  { %v1287_v61 = vmul.f32 %v1279_v63, %v1193_v15 }
 0x770   :  { %v1319_v9 = vadd.f32 %v1315_v50, %v1287_v61  ;;  %v1190_v50 = vmul.f32 %v3529_v3, %v3348_v58  ;;  %v1195_v3 = vrot.slane %v3365_v8, 1 }
 0x772   :  { %v1405_v19 = vpop.permute.xlu1 %1404 }
 0x773   :  { %v1413_v6 = vmul.f32 %v1405_v19, %v1319_v9 }
 0x775   :  { %v1445_v22 = vadd.f32 %v1441_v36, %v1413_v6  ;;  %v1943_v6 = vmul.f32 %v3496_v39, %v3330_v55  ;;  %v1321_v39 = vrot.slane %v3365_v8, 2 }
 0x777   :  { %v1531_v26 = vpop.permute.xlu1 %1530 }
 0x778   :  { %v1539_v41 = vmul.f32 %v1531_v26, %v1445_v22 }
 0x77a   :  { %v1571_v5 = vadd.f32 %v1567_v38, %v1539_v41  ;;  %v1535_v41 = vpop.permute.xlu0 %1534 }
 0x77c   :  { %v1657_v46 = vpop.permute.xlu1 %1656 }
 0x77d   :  { %v1665_v56 = vmul.f32 %v1657_v46, %v1571_v5 }
 0x77f   :  { %v3666_v51 = vadd.f32 %v1693_v25, %v1665_v56 }
 0x781   :  { %v1783_v60 = vpop.permute.xlu1 %1782 }
 0x782   :  { %v1791_v32 = vmul.f32 %v1783_v60, %v3666_v51  ;;  %v1816_v60 = vmul.f32 %v3504_v43, %v3589_v62 }
 0x784   :  { %v3670_v48 = vadd.f32 %v1819_v44, %v1791_v32  ;;  %v1820_v4 = vmul.f32 %v1816_v60, %v3348_v58 }
 0x786   :  { %v1153_v63 = vpop.permute.xlu1 %1152 }
 0x787   :  { %v1158_v61 = vmul.f32 %v1153_v63, %v3396_v42 }
 0x789   :  { %v1194_v59 = vadd.f32 %v1190_v50, %v1158_v61 }
 0x78b   :  { %v2875_v11 = vpack.c.bf16 %v1194_v59, %v1193_v15  ;;  %v1901_v19 = vpop.permute.xlu1 %1900  ;;  %v1288_v36 = vmul.f32 %v3600_v29, %v1194_v59  ;;  %v1442_v29 = vmul.f32 %v3535_v13, %v3348_v58  ;;  %v1568_v13 = vmul.f32 %v3538_v20, %v3348_v58 }
 0x78c   :  { %v1915_v21 = vmul.f32 %v1901_v19, %v3640_v35  ;;  %v1699_v59 = vrot.slane %v3365_v8, 5  ;;  %v1825_v19 = vrot.slane %v3365_v8, 6 }
 0x78d   :  { %2876 = vmatpush3.bf16.msra.mxu0 %v2875_v11  ;;  %v1320_v26 = vadd.f32 %v1316_v40, %v1288_v36  ;;  %v1945_v40 = vmul.f32 %v1941_v45, %v3343_v57  ;;  %v3874_v36 = vsub.s32 7, %v3152_v12  ;;  %v1951_v12 = vrot.slane %v3365_v8, 7 }
 0x78e   :  { %v3681_v38 = vadd.f32 %v1943_v6, %v1915_v21  ;;  %2883 = vmatprep.subr.bf16.mxu0 %v3037_v33 }
 0x78f   :  { %v2881_v42 = vpack.c.bf16 %v1320_v26, %v1319_v9  ;;  %v2064_v6 = vrot.slane %v3373_v24, %v3874_v36 }
 0x790   :  { %2751 = vmatmul.mubr.msk.f32.vlgmr.msra.gmra.mrb[28].mxu0 %vm60_vm0, %v1195_v3  ;;  %v1409_v2 = vpop.permute.xlu1 %1408 }
 0x791   :  { %v1414_v15 = vmul.f32 %v1409_v2, %v1320_v26  ;;  %2882 = vmatpush3.bf16.msra.mxu1 %v2881_v42  ;;  %2885 = vmatpush3.bf16.msra.mxu0 %v2884_v0  ;;  %v1787_v0 = vpop.permute.xlu0 %1786 }
 0x792   :  { %2889 = vmatprep.subr.bf16.mxu1 %v3037_v33  ;;  %2886 = vmatprep.subr.bf16.mxu0 %v3037_v33 }
 0x793   :  { %v1446_v9 = vadd.f32 %v1442_v29, %v1414_v15  ;;  %2772 = vmatprep.mubr.msk.f32.mxu0 %vm3032_vm1, %v3031_v7 }
 0x794   :  { %2762 = vmatmul.mubr.msk.f32.vlgmr.msra.gmra.mrb[26].mxu1 %vm60_vm0, %v1321_v39 }
 0x795   :  { %v2887_v46 = vpack.c.bf16 %v1446_v9, %v1445_v22  ;;  %v1905_v25 = vpop.permute.xlu1 %1904  ;;  %2891 = vmatpush3.bf16.msra.mxu1 %v2890_v18  ;;  %v1540_v1 = vmul.f32 %v1535_v41, %v1446_v9  ;;  %2783 = vmatprep.mubr.msk.f32.mxu1 %vm3032_vm1, %v3031_v7  ;;  %v1913_v32 = vpop.permute.xlu0 %1912 }
 0x796   :  { %v1916_v56 = vmul.f32 %v1905_v25, %v3649_v37  ;;  %2892 = vmatprep.subr.bf16.mxu1 %v3037_v33 }
 0x797   :  { %2888 = vmatpush3.bf16.msra.mxu0 %v2887_v46  ;;  %v1572_v20 = vadd.f32 %v1568_v13, %v1540_v1 }
 0x798   :  { %v3708_v22 = vadd.f32 %v1944_v49, %v1916_v56  ;;  %2895 = vmatprep.subr.bf16.mxu0 %v3037_v33 }
 0x799   :  { %v2893_v52 = vpack.c.bf16 %v1572_v20, %v1571_v5  ;;  %v1573_v5 = vrot.slane %v3365_v8, 4  ;;  %v2051_v61 = vpop.permute.xlu0 %2050 }
 0x79a   :  { %v2908_v30 = vpack.c.bf16 %v3708_v22, %v3681_v38  ;;  %v1661_v18 = vpop.permute.xlu1 %1660  ;;  %2773 = vmatmul.mubr.msk.f32.vlgmr.msra.gmra.mrb[30].mxu0 %vm60_vm0, %v1447_v54 }
 0x79b   :  { %v1666_v44 = vmul.f32 %v1661_v18, %v1572_v20  ;;  %2894 = vmatpush3.bf16.msra.mxu1 %v2893_v52  ;;  %2897 = vmatpush3.bf16.msra.mxu0 %v2896_v47  ;;  %v2086_v52 = vld [vmem:[%s3861_s14 + $0x18] sm:$0xff]  ;;  %v2087_v18 = vld [vmem:[%s3862_s15] sm:$0xf] }
 0x79c   :  { %2901 = vmatprep.subr.bf16.mxu1 %v3037_v33  ;;  %2898 = vmatprep.subr.bf16.mxu0 %v3037_v33 }
 0x79d   :  { %v1698_v63 = vadd.f32 %v1694_v14, %v1666_v44  ;;  %2794 = vmatprep.mubr.msk.f32.mxu0 %vm3032_vm1, %v3031_v7 }
 0x79e   :  { %2784 = vmatmul.mubr.msk.f32.vlgmr.msra.gmra.mrb[28].mxu1 %vm60_vm0, %v1573_v5 }
 0x79f   :  { %v2899_v43 = vpack.c.bf16 %v1698_v63, %v3666_v51  ;;  %v1792_v62 = vmul.f32 %v1787_v0, %v1698_v63  ;;  %v1933_v16 = vpop.permute.xlu1 %1932  ;;  %2903 = vmatpush3.bf16.msra.mxu1 %v2902_v17  ;;  %2805 = vmatprep.mubr.msk.f32.mxu1 %vm3032_vm1, %v3031_v7 }
 0x7a0   :  { %v1942_v47 = vmul.f32 %v3489_v31, %v1933_v16  ;;  %2904 = vmatprep.subr.bf16.mxu1 %v3037_v33 }
 0x7a1   :  { %v1824_v50 = vadd.f32 %v1820_v4, %v1792_v62  ;;  %2900 = vmatpush3.bf16.msra.mxu0 %v2899_v43 }
 0x7a2   :  { %v1946_v51 = vmul.f32 %v1942_v47, %v3348_v58  ;;  %2907 = vmatprep.subr.bf16.mxu0 %v3037_v33 }
 0x7a3   :  { %v1918_v35 = vmul.f32 %v1913_v32, %v1824_v50  ;;  %v1909_v37 = vpop.permute.xlu1 %1908  ;;  %v2905_v17 = vpack.c.bf16 %v1824_v50, %v3670_v48 }
 0x7a4   :  { %v1917_v28 = vmul.f32 %v1909_v37, %v3670_v48  ;;  %2795 = vmatmul.mubr.msk.f32.vlgmr.msra.gmra.mrb[32].mxu0 %vm60_vm0, %v1699_v59  ;;  %v2027_v48 = vpop.permute.xlu0 %2026 }
 0x7a5   :  { %v1950_v31 = vadd.f32 %v1946_v51, %v1918_v35  ;;  %2906 = vmatpush3.bf16.msra.mxu1 %v2905_v17  ;;  %2909 = vmatpush3.bf16.msra.mxu0 %v2908_v30  ;;  %v2041_v42 = vmul.f32 %v2027_v48, %v3681_v38  ;;  %v2066_v38 = vmul.f32 %v2064_v6, %v2051_v61  ;;  %v2533_v48 = vmul.f32 -1.442695, %v3367_v10 }
 0x7a6   :  { %v1949_v11 = vadd.f32 %v1945_v40, %v1917_v28  ;;  %2910 = vmatprep.subr.bf16.mxu0 %v3037_v33  ;;  %2816 = vmatprep.mubr.msk.f32.mxu0 %vm3032_vm1, %v3031_v7 }
 0x7a7   :  { %2913 = vmatprep.subr.bf16.mxu1 %v3037_v33  ;;  %v2070_v46 = vmul.f32 %v2066_v38, %v3335_v23  ;;  %v2083_v23 = vld [vmem:[%s3861_s14] sm:$0xff]  ;;  %3023 = vpow2.f32 %v2533_v48 }
 0x7a8   :  { %v2911_v21 = vpack.c.bf16 %v1950_v31, %v1949_v11  ;;  %v2047_v26 = vpop.permute.xlu1 %2046  ;;  %2806 = vmatmul.mubr.msk.f32.vlgmr.msra.gmra.mrb[30].mxu1 %vm60_vm0, %v1825_v19  ;;  %v2035_v15 = vpop.permute.xlu0 %2034 }
 0x7a9   :  { %v2065_v3 = vmul.f32 %v2064_v6, %v2047_v26  ;;  %2827 = vmatprep.mubr.msk.f32.mxu1 %vm3032_vm1, %v3031_v7  ;;  %v2043_v39 = vmul.f32 %v2035_v15, %v1949_v11 }
 0x7aa   :  { %2912 = vmatpush3.bf16.msra.mxu0 %v2911_v21 }
 0x7ab   :  { %v2069_v41 = vmul.f32 %v2065_v3, %v3330_v55  ;;  %2846 = vmatprep.subr.mxu0 %v3031_v7 }
 0x7ac   :  { %v2055_v24 = vpop.permute.xlu1 %2054 }
 0x7ad   :  { %v2073_v2 = vadd.f32 %v2069_v41, %v2041_v42  ;;  %v2067_v29 = vmul.f32 %v2064_v6, %v2055_v24  ;;  %2817 = vmatmul.mubr.msk.f32.vlgmr.msra.gmra.mrb[34].mxu0 %vm60_vm0, %v1951_v12  ;;  %v3029_v12 = vld [vmem:[%s3872_s19 + $0x8] sm:$0xf] }
 0x7ae   :  { %2848 = vmatprep.mubr.msk.f32.mxu0 %vm3032_vm1, %v3031_v7  ;;  %2847 = vmatpush3.msk.msra.mxu0 %vm2166_vm8, %v2087_v18  ;;  %v2394_v24 = vrot.slane %v3029_v12, %v3190_v27 }
 0x7af   :  { %2077 = vst.msk [vmem:[%s3860_s18] sm:$0xff] %vm60_vm0, %v2073_v2  ;;  %v2071_v55 = vmul.f32 %v2067_v29, %v3343_v57  ;;  %2851 = vmatprep.subr.bf16.mxu0 %v3031_v7 }
 0x7b0   :  { %v2059_v8 = vpop.permute.xlu1 %2058 }
 0x7b1   :  { %v2075_v9 = vadd.f32 %v2071_v55, %v2043_v39  ;;  %v2068_v25 = vmul.f32 %v2064_v6, %v2059_v8  ;;  %v3011_v6 = vld [vmem:[%s3863_s12] sm:$0xff]   ;;  %v3024_v21 = vpop.eup %3023 }
 0x7b2   :  { %v2404_v3 = vadd.f32 1.0, %v3024_v21 }
 0x7b3   :  { %2079 = vst.msk [vmem:[%s3860_s18 + $0x10] sm:$0xff] %vm60_vm0, %v2075_v9  ;;  %v2072_v56 = vmul.f32 %v2068_v25, %v3348_v58  ;;  %v2084_v58 = vld [vmem:[%s3861_s14 + $0x8] sm:$0xff] }
 0x7b4   :  { %v2031_v13 = vpop.permute.xlu1 %2030  ;;  %v2914_v54 = vpack.c.bf16 %v2084_v58, %v2083_v23 }
 0x7b5   :  { %v2042_v1 = vmul.f32 %v2031_v13, %v3708_v22  ;;  %v2085_v22 = vld [vmem:[%s3861_s14 + $0x10] sm:$0xff] }
 0x7b6   :  { %2915 = vmatpush3.bf16.msra.mxu1 %v2914_v54  ;;  %v2917_v30 = vpack.c.bf16 %v2086_v52, %v2085_v22 }
 0x7b7   :  { %v2074_v49 = vadd.f32 %v2070_v46, %v2042_v1  ;;  %2916 = vmatprep.subr.bf16.mxu1 %v3037_v33  ;;  %v3030_v46 = vld [vmem:[%s3871_s29] sm:$0xff] }
 0x7b8   :  { %v2039_v0 = vpop.permute.xlu1 %2038 }
 0x7b9   :  { %2078 = vst.msk [vmem:[%s3860_s18 + $0x8] sm:$0xff] %vm60_vm0, %v2074_v49  ;;  %v2044_v57 = vmul.f32 %v2039_v0, %v1950_v31 }
 0x7ba   :  { %2918 = vmatpush3.bf16.msra.mxu1 %v2917_v30 }
 0x7bb   :  { %v2076_v20 = vadd.f32 %v2072_v56, %v2044_v57  ;;  %2830 = vmatprep.subr.mxu1 %v3031_v7 }
 0x7bd   :  { %2080 = vst.msk [vmem:[%s3860_s18 + $0x18] sm:$0xff] %vm60_vm0, %v2076_v20 }
 0x863   :  { %v1264_v14 = vpop.f32.mrb[28].mxu0 }
 0x864   :  { %1268 = vst.msk [vmem:[#allocation2 + $0x1] sm:$0x1] %vm1133_vm7, %v1264_v14  ;;  %v2752_v60 = vpop.f32.mrb[29].mxu0 }
 0x867   :  { %v1390_v44 = vpop.f32.mrb[26].mxu1 }
 0x868   :  { %1394 = vst.msk [vmem:[#allocation2 + $0x2] sm:$0x1] %vm1133_vm7, %v1390_v44  ;;  %v2763_v32 = vpop.f32.mrb[27].mxu1 }
 0x86d   :  { %v1516_v5 = vpop.f32.mrb[30].mxu0 }
 0x86e   :  { %1520 = vst.msk [vmem:[#allocation2 + $0x3] sm:$0x1] %vm1133_vm7, %v1516_v5  ;;  %v2774_v63 = vpop.f32.mrb[31].mxu0 }
 0x871   :  { %v1642_v4 = vpop.f32.mrb[28].mxu1 }
 0x872   :  { %1646 = vst.msk [vmem:[#allocation2 + $0x4] sm:$0x1] %vm1133_vm7, %v1642_v4  ;;  %v2785_v43 = vpop.f32.mrb[29].mxu1 }
 0x877   :  { %v1768_v62 = vpop.f32.mrb[32].mxu0 }
 0x878   :  { %1772 = vst.msk [vmem:[#allocation2 + $0x5] sm:$0x1] %vm1133_vm7, %v1768_v62  ;;  %v2796_v16 = vpop.f32.mrb[33].mxu0 }
 0x87b   :  { %v1894_v45 = vpop.f32.mrb[30].mxu1 }
 0x87c   :  { %1898 = vst.msk [vmem:[#allocation2 + $0x6] sm:$0x1] %vm1133_vm7, %v1894_v45  ;;  %v2807_v47 = vpop.f32.mrb[31].mxu1 }
 0x880   :  { %v2020_v50 = vpop.f32.mrb[34].mxu0 }
 0x881   :  { %2024 = vst.msk [vmem:[#allocation2 + $0x7] sm:$0x1] %vm1133_vm7, %v2020_v50  ;;  %v2818_v61 = vpop.f32.mrb[35].mxu0 }
 0x888   :  { %v2081_v51 = vld [vmem:[#allocation2] sm:$0xff] }
 0x889   :  { %v2082_v59 = vadd.f32 %v2081_v51, %v3464_v53 }
 0x88b   :  { %2828 = vmatmul.mubr.msk.f32.vlgmr.msra.gmra.mrb[32].mxu1 %vm60_vm0, %v2082_v59 }
 0x88c   :  { %2831 = vmatpush3.msk.msra.mxu1 %vm2166_vm8, %v2087_v18  ;;  %2832 = vmatprep.mubr.msk.f32.mxu1 %vm3032_vm1, %v3031_v7 }
 0x88d   :  { %2919 = vmatprep.subr.bf16.mxu1 %v3037_v33 }
 0x95e   :  { %v2157_v35 = vpop.f32.mrb[32].mxu1 }
 0x95f   :  { %v2161_v37 = vmul.f32 0.125, %v2157_v35  ;;  %v2829_v17 = vpop.f32.mrb[33].mxu1 }
 0x961   :  { %2833 = vmatmul.mubr.msk.f32.vlgmr.msra.gmra.mrb[34].mxu1 %vm2162_vm9, %v2161_v37 }
 0x962   :  { %2921 = vmatpush3.bf16.msra.mxu1 %v2914_v54  ;;  %2843 = vmatprep.mubr.msk.f32.mxu1 %vm3032_vm1, %v3031_v7 }
 0x963   :  { %2922 = vmatprep.subr.bf16.mxu1 %v3037_v33  ;;  %v3012_v33 = vld [vmem:[%s3863_s12 + $0x8] sm:$0xff]  }
 0x966   :  { %2924 = vmatpush3.bf16.msra.mxu1 %v2917_v30 }
 0xa34   :  { %v2236_v53 = vpop.f32.mrb[34].mxu1 }
 0xa35   :  { %v2240_v40 = vsub.f32 %v2082_v59, %v2236_v53  ;;  %v2834_v28 = vpop.f32.mrb[35].mxu1 }
 0xa37   :  { %v2241_v31 = vmul.f32 %v2240_v40, %v2240_v40 }
 0xa39   :  { %2844 = vmatmul.mubr.msk.f32.vlgmr.msra.gmra.mrb[36].mxu1 %vm60_vm0, %v2241_v31 }
 0xb0c   :  { %v2311_v11 = vpop.f32.mrb[36].mxu1 }
 0xb0d   :  { %v2315_v19 = vmul.f32 0.125, %v2311_v11  ;;  %v2845_v36 = vpop.f32.mrb[37].mxu1 }
 0xb0f   :  { %2849 = vmatmul.mubr.msk.f32.vlgmr.msra.gmra.mrb[36].mxu0 %vm2162_vm9, %v2315_v19 }
 0xb10   :  { %2855 = vmatprep.mubr.msk.bf16.mxu0 %vm3032_vm1, %v3031_v7  ;;  %2852 = vmatpush3.bf16.msra.mxu0 %v3011_v6 }
 0xb11   :  { %2853 = vmatprep.subr.bf16.mxu0 %v3031_v7  ;;  %v2399_v7 = vrot.slane %v3029_v12, %v3285_v34 }
 0xb14   :  { %2854 = vmatpush3.bf16.msra.mxu0 %v3012_v33 }
 0xbe2   :  { %v2385_v26 = vpop.f32.mrb[36].mxu0 }
 0xbe3   :  { %v2386_v42 = vadd.f32 0.00064, %v2385_v26  ;;  %v2850_v41 = vpop.f32.mrb[37].mxu0 }
 0xbe5   :  { %3025 = vrsqrt.f32 %v2386_v42 }
 0xbe6   :  { %3027 = vrcp.f32 %v2404_v3 }
 0xbef   :  { %v3026_v2 = vpop.eup %3025 }
 0xbf0   :  { %v2390_v29 = vmul.f32 %v3026_v2, %v2240_v40  ;;  %v3028_v15 = vpop.eup %3027 }
 0xbf1   :  { %v2407_v55 = vmul.f32 %v3028_v15, %v3367_v10 }
 0xbf2   :  { %v2395_v39 = vmul.f32 %v2394_v24, %v2390_v29 }
 0xbf4   :  { %v2400_v8 = vadd.f32 %v2399_v7, %v2395_v39 }
 0xbf6   :  { %v2408_v38 = vmul.f32 %v2407_v55, %v2400_v8 }
 0xbf8   :  { %v2409_v9 = vpack.c.bf16 %v2408_v38, %v2408_v38 }
 0xbfa   :  { %2856 = vmatmul.mubr.msk.bf16.vlgmr.msra.gmra.mrb[40].mxu0 %vm60_vm0, %v2409_v9 }
 0xccd   :  { %v2463_v13 = vpop.f32.mrb[40].mxu0 }
 0xcce   :  { %v2469_v25 = vadd.f32 %v3030_v46, %v2463_v13  ;;  %v2857_v27 = vpop.f32.mrb[41].mxu0 }
 0xccf   :  { %v2466_v1 = vpop.f32.mrb[42].mxu0 }
 0xcd0   :  { %2470 = vst.msk [vmem:[%s3864_s16] sm:$0xff] %vm60_vm0, %v2469_v25  ;;  %v2858_v34 = vpop.f32.mrb[43].mxu0 }

</bundles_post_ra>
